<compile_context>
chip_gen: v7x
topology: tpu7x:2x2x1
jax: 0.10.0
libtpu: 0.0.40
codegen_flags: <defaults>
</compile_context>

<pallas_src>
import functools

import jax
import jax.numpy as jnp
from jax.experimental import pallas as pl
from jax.experimental.pallas import tpu as pltpu


def mlp_kernel(x_ref,
               w1_ref, b1_ref,
               w2_ref, b2_ref,
               w3_ref, b3_ref,
               w4_ref, b4_ref,
               w5_ref, b5_ref,
               o_ref):
    cdt = w1_ref.dtype  # bf16 MXU operand dtype

    def layer(h_bf16, w_ref, b_ref):
        # bf16 operands -> MXU, f32 accumulation; bias add + ReLU in f32 (VPU).
        acc = jnp.dot(h_bf16, w_ref[...], preferred_element_type=jnp.float32)
        return jnp.maximum(acc + b_ref[...], 0.0)

    # Dropout(p=0) is identity and relu(relu(h)) == relu(h), so the extra
    # F.relu(dropout(.)) calls in the PyTorch forward fold away.  The final
    # l5 output IS ReLU'd, exactly as in the torch forward.
    h = layer(x_ref[...].astype(cdt), w1_ref, b1_ref)   # in-kernel x cast
    h = layer(h.astype(cdt), w2_ref, b2_ref)
    h = layer(h.astype(cdt), w3_ref, b3_ref)
    h = layer(h.astype(cdt), w4_ref, b4_ref)
    h = layer(h.astype(cdt), w5_ref, b5_ref)
    o_ref[...] = h.astype(o_ref.dtype)


def _round_up(n, m):
    return ((n + m - 1) // m) * m


def _pad_to(arr, shape):
    pads = [(0, s - d) for d, s in zip(arr.shape, shape)]
    if any(p[1] for p in pads):
        return jnp.pad(arr, pads)
    return arr


def three_layer_net(x, params, *, batch_tile=512, compute_dtype=jnp.bfloat16):
    """x: (N, d_in) f32; params: w1..w5 as (in, out), b1..b5 as (1, out)."""
    N, d_in = x.shape
    H = params["w1"].shape[1]
    d_out = params["w5"].shape[1]

    # Hidden dim padded to MXU granularity: 256 on the 256x256 MXUs once H is
    # large enough to care, else 128.  d_in / d_out stay exact (block dim equal
    # to the full array dim is legal and keeps the x/out DMA streams minimal).
    Hp = _round_up(H, 256) if H >= 256 else _round_up(H, 128)

    # Batch tile: big enough to amortize the ~0.35us/step overhead; multiple of
    # 16 for bf16 sublane packing; never bigger than the (16-rounded) batch.
    bt = min(_round_up(batch_tile, 16), _round_up(N, 16))
    Np = _round_up(N, bt)

    # x kept f32 and unpadded in the feature dim; only the batch is padded (and
    # only if N is not a multiple of bt).  The bf16 cast happens in-kernel.
    xp = _pad_to(x, (Np, d_in))

    dims = [(d_in, Hp), (Hp, Hp), (Hp, Hp), (Hp, Hp), (Hp, d_out)]
    args = [xp]
    for i, (rin, cout) in enumerate(dims, start=1):
        # Zero padding is exact: padded weight rows/cols and bias lanes are 0,
        # so padded hidden lanes stay 0 through every ReLU layer.
        args.append(_pad_to(params[f"w{i}"], (rin, cout)).astype(compute_dtype))
        args.append(_pad_to(params[f"b{i}"], (1, cout)).astype(jnp.float32))

    weight_bytes = sum(r * c * 2 + c * 4 for r, c in dims)
    # TODO(synk): for H large enough that resident weights exceed ~40 MiB
    # (v7x VMEM ceiling), tile the hidden dim with a K/N grid axis instead.
    assert weight_bytes < 40 * 1024 * 1024, (
        "Resident weights would exceed ~40 MiB of VMEM; tile the hidden dim "
        "(extra grid axis / pltpu.emit_pipeline over weight slabs) first.")

    # Footprint estimate: single-buffered weights + double-buffered x/out
    # blocks + a handful of (bt, Hp) f32 intermediates.
    est = weight_bytes + 4 * bt * (d_in + d_out) * 4 + 8 * bt * Hp * 4
    vmem_limit = int(min(max(32 << 20, 2 * est), 48 << 20))

    grid = (Np // bt,)
    out_shape = jax.ShapeDtypeStruct((Np, d_out), jnp.float32)

    def run(single_buffer_weights):
        if single_buffer_weights:
            # Constant block index across the grid -> double buffering is pure
            # VMEM waste; keep a single buffer.
            resident = functools.partial(pl.BlockSpec,
                                         pipeline_mode=pl.Buffered(1))
        else:
            resident = pl.BlockSpec

        in_specs = [pl.BlockSpec((bt, d_in), lambda i: (i, 0))]
        for rin, cout in dims:
            in_specs.append(resident((rin, cout), lambda i: (0, 0)))
            in_specs.append(resident((1, cout), lambda i: (0, 0)))
        out_specs = pl.BlockSpec((bt, d_out), lambda i: (i, 0))

        return pl.pallas_call(
            mlp_kernel,
            out_shape=out_shape,
            grid_spec=pltpu.PrefetchScalarGridSpec(
                num_scalar_prefetch=0,
                grid=grid,
                in_specs=in_specs,
                out_specs=out_specs,
            ),
            compiler_params=pltpu.CompilerParams(
                dimension_semantics=("parallel",),
                vmem_limit_bytes=vmem_limit,
            ),
        )(*args)

    try:
        out = run(True)
    except Exception:
        # Fallback if this JAX build rejects Buffered(1) single-buffering.
        out = run(False)

    if Np != N:
        out = out[:N]
    return out


def init_params(key, d_in, H, d_out):
    """Deterministic init mimicking nn.Linear's U(-1/sqrt(fan_in), 1/sqrt(fan_in))."""
    dims = [(d_in, H), (H, H), (H, H), (H, H), (H, d_out)]
    params = {}
    for idx, (fan_in, fan_out) in enumerate(dims, start=1):
        key, kw, kb = jax.random.split(key, 3)
        bound = 1.0 / (fan_in ** 0.5)
        params[f"w{idx}"] = jax.random.uniform(
            kw, (fan_in, fan_out), jnp.float32, minval=-bound, maxval=bound)
        params[f"b{idx}"] = jax.random.uniform(
            kb, (1, fan_out), jnp.float32, minval=-bound, maxval=bound)
    return params


def reference(x, p, compute_dtype=jnp.bfloat16):
    """Pure-JAX reference with identical bf16-operand / f32-accumulate math."""
    h = x
    for i in range(1, 6):
        acc = jnp.dot(h.astype(compute_dtype),
                      p[f"w{i}"].astype(compute_dtype),
                      preferred_element_type=jnp.float32)
        h = jnp.maximum(acc + p[f"b{i}"], 0.0)
    return h


if __name__ == "__main__":
    d_in, H, d_out = 16, 32, 8
    N = 512  # 2 grid steps of 256 rows -> both v7x TensorCores get work

    key = jax.random.PRNGKey(0)
    key, kx = jax.random.split(key)
    x = jax.random.normal(kx, (N, d_in), jnp.float32)
    params = init_params(key, d_in, H, d_out)

    out = three_layer_net(x, params, batch_tile=256)
    out = jax.block_until_ready(out)

    ref = reference(x, params)
    assert out.shape == (N, d_out)
    assert jnp.allclose(out, ref, atol=1e-2, rtol=1e-2), "mismatch vs reference"

    print("KERNEL_OK")
</pallas_src>

<mosaic_0001>
module attributes {stable_mosaic.version = 11 : i64} {
  func.func @mlp_kernel(%arg0: i32, %arg1: memref<256x16xf32, #tpu.memory_space<vmem>>, %arg2: memref<16x128xbf16, #tpu.memory_space<vmem>>, %arg3: memref<1x128xf32, #tpu.memory_space<vmem>>, %arg4: memref<128x128xbf16, #tpu.memory_space<vmem>>, %arg5: memref<1x128xf32, #tpu.memory_space<vmem>>, %arg6: memref<128x128xbf16, #tpu.memory_space<vmem>>, %arg7: memref<1x128xf32, #tpu.memory_space<vmem>>, %arg8: memref<128x128xbf16, #tpu.memory_space<vmem>>, %arg9: memref<1x128xf32, #tpu.memory_space<vmem>>, %arg10: memref<128x8xbf16, #tpu.memory_space<vmem>>, %arg11: memref<1x8xf32, #tpu.memory_space<vmem>>, %arg12: memref<256x8xf32, #tpu.memory_space<vmem>>) attributes {dimension_semantics = [#tpu.dimension_semantics<parallel>], iteration_bounds = array<i64: 2>, scalar_prefetch = 0 : i64, scratch_operands = 0 : i64, tpu.core_type = #tpu.core_type<tc>, window_params = [{transform_indices = @transform_0, window_bounds = array<i64: 256, 16>}, {pipeline_mode = #tpu.pipeline_mode<synchronous>, transform_indices = @transform_1, window_bounds = array<i64: 16, 128>}, {pipeline_mode = #tpu.pipeline_mode<synchronous>, transform_indices = @transform_2, window_bounds = array<i64: 1, 128>}, {pipeline_mode = #tpu.pipeline_mode<synchronous>, transform_indices = @transform_3, window_bounds = array<i64: 128, 128>}, {pipeline_mode = #tpu.pipeline_mode<synchronous>, transform_indices = @transform_4, window_bounds = array<i64: 1, 128>}, {pipeline_mode = #tpu.pipeline_mode<synchronous>, transform_indices = @transform_5, window_bounds = array<i64: 128, 128>}, {pipeline_mode = #tpu.pipeline_mode<synchronous>, transform_indices = @transform_6, window_bounds = array<i64: 1, 128>}, {pipeline_mode = #tpu.pipeline_mode<synchronous>, transform_indices = @transform_7, window_bounds = array<i64: 128, 128>}, {pipeline_mode = #tpu.pipeline_mode<synchronous>, transform_indices = @transform_8, window_bounds = array<i64: 1, 128>}, {pipeline_mode = #tpu.pipeline_mode<synchronous>, transform_indices = @transform_9, window_bounds = array<i64: 128, 8>}, {pipeline_mode = #tpu.pipeline_mode<synchronous>, transform_indices = @transform_10, window_bounds = array<i64: 1, 8>}, {transform_indices = @transform_11, window_bounds = array<i64: 256, 8>}]} {
    %c0 = arith.constant 0 : index
    %c0_0 = arith.constant 0 : index
    %0 = vector.load %arg1[%c0, %c0_0] : memref<256x16xf32, #tpu.memory_space<vmem>>, vector<256x16xf32>
    %1 = arith.truncf %0 : vector<256x16xf32> to vector<256x16xbf16>
    %c0_1 = arith.constant 0 : index
    %c0_2 = arith.constant 0 : index
    %2 = vector.load %arg2[%c0_1, %c0_2] : memref<16x128xbf16, #tpu.memory_space<vmem>>, vector<16x128xbf16>
    %cst = arith.constant dense<0.000000e+00> : vector<256x128xf32>
    %3 = tpu.matmul %1, %2, %cst {dimension_numbers = #tpu.dot_dimension_numbers<[1], [0], [0], [1], [0, 0, 1, 1], [], []>} : vector<256x16xbf16>, vector<16x128xbf16>, vector<256x128xf32> -> vector<256x128xf32>
    %c0_3 = arith.constant 0 : index
    %c0_4 = arith.constant 0 : index
    %4 = vector.load %arg3[%c0_3, %c0_4] : memref<1x128xf32, #tpu.memory_space<vmem>>, vector<1x128xf32>
    %5 = vector.broadcast %4 : vector<1x128xf32> to vector<256x128xf32>
    %6 = arith.addf %3, %5 : vector<256x128xf32>
    %cst_5 = arith.constant 0.000000e+00 : f32
    %7 = vector.broadcast %cst_5 : f32 to vector<256x128xf32>
    %8 = arith.maximumf %6, %7 : vector<256x128xf32>
    %9 = arith.truncf %8 : vector<256x128xf32> to vector<256x128xbf16>
    %c0_6 = arith.constant 0 : index
    %c0_7 = arith.constant 0 : index
    %10 = vector.load %arg4[%c0_6, %c0_7] : memref<128x128xbf16, #tpu.memory_space<vmem>>, vector<128x128xbf16>
    %cst_8 = arith.constant dense<0.000000e+00> : vector<256x128xf32>
    %11 = tpu.matmul %9, %10, %cst_8 {dimension_numbers = #tpu.dot_dimension_numbers<[1], [0], [0], [1], [0, 0, 1, 1], [], []>} : vector<256x128xbf16>, vector<128x128xbf16>, vector<256x128xf32> -> vector<256x128xf32>
    %c0_9 = arith.constant 0 : index
    %c0_10 = arith.constant 0 : index
    %12 = vector.load %arg5[%c0_9, %c0_10] : memref<1x128xf32, #tpu.memory_space<vmem>>, vector<1x128xf32>
    %13 = vector.broadcast %12 : vector<1x128xf32> to vector<256x128xf32>
    %14 = arith.addf %11, %13 : vector<256x128xf32>
    %cst_11 = arith.constant 0.000000e+00 : f32
    %15 = vector.broadcast %cst_11 : f32 to vector<256x128xf32>
    %16 = arith.maximumf %14, %15 : vector<256x128xf32>
    %17 = arith.truncf %16 : vector<256x128xf32> to vector<256x128xbf16>
    %c0_12 = arith.constant 0 : index
    %c0_13 = arith.constant 0 : index
    %18 = vector.load %arg6[%c0_12, %c0_13] : memref<128x128xbf16, #tpu.memory_space<vmem>>, vector<128x128xbf16>
    %cst_14 = arith.constant dense<0.000000e+00> : vector<256x128xf32>
    %19 = tpu.matmul %17, %18, %cst_14 {dimension_numbers = #tpu.dot_dimension_numbers<[1], [0], [0], [1], [0, 0, 1, 1], [], []>} : vector<256x128xbf16>, vector<128x128xbf16>, vector<256x128xf32> -> vector<256x128xf32>
    %c0_15 = arith.constant 0 : index
    %c0_16 = arith.constant 0 : index
    %20 = vector.load %arg7[%c0_15, %c0_16] : memref<1x128xf32, #tpu.memory_space<vmem>>, vector<1x128xf32>
    %21 = vector.broadcast %20 : vector<1x128xf32> to vector<256x128xf32>
    %22 = arith.addf %19, %21 : vector<256x128xf32>
    %cst_17 = arith.constant 0.000000e+00 : f32
    %23 = vector.broadcast %cst_17 : f32 to vector<256x128xf32>
    %24 = arith.maximumf %22, %23 : vector<256x128xf32>
    %25 = arith.truncf %24 : vector<256x128xf32> to vector<256x128xbf16>
    %c0_18 = arith.constant 0 : index
    %c0_19 = arith.constant 0 : index
    %26 = vector.load %arg8[%c0_18, %c0_19] : memref<128x128xbf16, #tpu.memory_space<vmem>>, vector<128x128xbf16>
    %cst_20 = arith.constant dense<0.000000e+00> : vector<256x128xf32>
    %27 = tpu.matmul %25, %26, %cst_20 {dimension_numbers = #tpu.dot_dimension_numbers<[1], [0], [0], [1], [0, 0, 1, 1], [], []>} : vector<256x128xbf16>, vector<128x128xbf16>, vector<256x128xf32> -> vector<256x128xf32>
    %c0_21 = arith.constant 0 : index
    %c0_22 = arith.constant 0 : index
    %28 = vector.load %arg9[%c0_21, %c0_22] : memref<1x128xf32, #tpu.memory_space<vmem>>, vector<1x128xf32>
    %29 = vector.broadcast %28 : vector<1x128xf32> to vector<256x128xf32>
    %30 = arith.addf %27, %29 : vector<256x128xf32>
    %cst_23 = arith.constant 0.000000e+00 : f32
    %31 = vector.broadcast %cst_23 : f32 to vector<256x128xf32>
    %32 = arith.maximumf %30, %31 : vector<256x128xf32>
    %33 = arith.truncf %32 : vector<256x128xf32> to vector<256x128xbf16>
    %c0_24 = arith.constant 0 : index
    %c0_25 = arith.constant 0 : index
    %34 = vector.load %arg10[%c0_24, %c0_25] : memref<128x8xbf16, #tpu.memory_space<vmem>>, vector<128x8xbf16>
    %cst_26 = arith.constant dense<0.000000e+00> : vector<256x8xf32>
    %35 = tpu.matmul %33, %34, %cst_26 {dimension_numbers = #tpu.dot_dimension_numbers<[1], [0], [0], [1], [0, 0, 1, 1], [], []>} : vector<256x128xbf16>, vector<128x8xbf16>, vector<256x8xf32> -> vector<256x8xf32>
    %c0_27 = arith.constant 0 : index
    %c0_28 = arith.constant 0 : index
    %36 = vector.load %arg11[%c0_27, %c0_28] : memref<1x8xf32, #tpu.memory_space<vmem>>, vector<1x8xf32>
    %37 = vector.broadcast %36 : vector<1x8xf32> to vector<256x8xf32>
    %38 = arith.addf %35, %37 : vector<256x8xf32>
    %cst_29 = arith.constant 0.000000e+00 : f32
    %39 = vector.broadcast %cst_29 : f32 to vector<256x8xf32>
    %40 = arith.maximumf %38, %39 : vector<256x8xf32>
    %c0_30 = arith.constant 0 : index
    %c0_31 = arith.constant 0 : index
    %41 = vector.load %arg12[%c0_30, %c0_31] : memref<256x8xf32, #tpu.memory_space<vmem>>, vector<256x8xf32>
    tpu.vector_store %arg12[%c0_30, %c0_31], %40 {strides = array<i32>} : memref<256x8xf32, #tpu.memory_space<vmem>>, vector<256x8xf32>,
    return
  }
  func.func @transform_0(%arg0: i32) -> (i32, i32) {
    %c0_i32 = arith.constant 0 : i32
    %c0_i32_0 = arith.constant 0 : i32
    return %arg0, %c0_i32 : i32, i32
  }
  func.func @transform_1(%arg0: i32) -> (i32, i32) {
    %c0_i32 = arith.constant 0 : i32
    %c0_i32_0 = arith.constant 0 : i32
    %c0_i32_1 = arith.constant 0 : i32
    return %c0_i32, %c0_i32_0 : i32, i32
  }
  func.func @transform_2(%arg0: i32) -> (i32, i32) {
    %c0_i32 = arith.constant 0 : i32
    %c0_i32_0 = arith.constant 0 : i32
    %c0_i32_1 = arith.constant 0 : i32
    return %c0_i32, %c0_i32_0 : i32, i32
  }
  func.func @transform_3(%arg0: i32) -> (i32, i32) {
    %c0_i32 = arith.constant 0 : i32
    %c0_i32_0 = arith.constant 0 : i32
    %c0_i32_1 = arith.constant 0 : i32
    return %c0_i32, %c0_i32_0 : i32, i32
  }
  func.func @transform_4(%arg0: i32) -> (i32, i32) {
    %c0_i32 = arith.constant 0 : i32
    %c0_i32_0 = arith.constant 0 : i32
    %c0_i32_1 = arith.constant 0 : i32
    return %c0_i32, %c0_i32_0 : i32, i32
  }
  func.func @transform_5(%arg0: i32) -> (i32, i32) {
    %c0_i32 = arith.constant 0 : i32
    %c0_i32_0 = arith.constant 0 : i32
    %c0_i32_1 = arith.constant 0 : i32
    return %c0_i32, %c0_i32_0 : i32, i32
  }
  func.func @transform_6(%arg0: i32) -> (i32, i32) {
    %c0_i32 = arith.constant 0 : i32
    %c0_i32_0 = arith.constant 0 : i32
    %c0_i32_1 = arith.constant 0 : i32
    return %c0_i32, %c0_i32_0 : i32, i32
  }
  func.func @transform_7(%arg0: i32) -> (i32, i32) {
    %c0_i32 = arith.constant 0 : i32
    %c0_i32_0 = arith.constant 0 : i32
    %c0_i32_1 = arith.constant 0 : i32
    return %c0_i32, %c0_i32_0 : i32, i32
  }
  func.func @transform_8(%arg0: i32) -> (i32, i32) {
    %c0_i32 = arith.constant 0 : i32
    %c0_i32_0 = arith.constant 0 : i32
    %c0_i32_1 = arith.constant 0 : i32
    return %c0_i32, %c0_i32_0 : i32, i32
  }
  func.func @transform_9(%arg0: i32) -> (i32, i32) {
    %c0_i32 = arith.constant 0 : i32
    %c0_i32_0 = arith.constant 0 : i32
    %c0_i32_1 = arith.constant 0 : i32
    return %c0_i32, %c0_i32_0 : i32, i32
  }
  func.func @transform_10(%arg0: i32) -> (i32, i32) {
    %c0_i32 = arith.constant 0 : i32
    %c0_i32_0 = arith.constant 0 : i32
    %c0_i32_1 = arith.constant 0 : i32
    return %c0_i32, %c0_i32_0 : i32, i32
  }
  func.func @transform_11(%arg0: i32) -> (i32, i32) {
    %c0_i32 = arith.constant 0 : i32
    %c0_i32_0 = arith.constant 0 : i32
    return %arg0, %c0_i32 : i32, i32
  }
}

module attributes {stable_mosaic.version = 11 : i64} {
  func.func @mlp_kernel(%arg0: i32, %arg1: memref<256x16xf32, #tpu.memory_space<vmem>>, %arg2: memref<16x128xbf16, #tpu.memory_space<vmem>>, %arg3: memref<1x128xf32, #tpu.memory_space<vmem>>, %arg4: memref<128x128xbf16, #tpu.memory_space<vmem>>, %arg5: memref<1x128xf32, #tpu.memory_space<vmem>>, %arg6: memref<128x128xbf16, #tpu.memory_space<vmem>>, %arg7: memref<1x128xf32, #tpu.memory_space<vmem>>, %arg8: memref<128x128xbf16, #tpu.memory_space<vmem>>, %arg9: memref<1x128xf32, #tpu.memory_space<vmem>>, %arg10: memref<128x8xbf16, #tpu.memory_space<vmem>>, %arg11: memref<1x8xf32, #tpu.memory_space<vmem>>, %arg12: memref<256x8xf32, #tpu.memory_space<vmem>>) attributes {dimension_semantics = [#tpu.dimension_semantics<parallel>], iteration_bounds = array<i64: 2>, scalar_prefetch = 0 : i64, scratch_operands = 0 : i64, tpu.core_type = #tpu.core_type<tc>, window_params = [{transform_indices = @transform_0, window_bounds = array<i64: 256, 16>}, {pipeline_mode = #tpu.pipeline_mode<synchronous>, transform_indices = @transform_1, window_bounds = array<i64: 16, 128>}, {pipeline_mode = #tpu.pipeline_mode<synchronous>, transform_indices = @transform_2, window_bounds = array<i64: 1, 128>}, {pipeline_mode = #tpu.pipeline_mode<synchronous>, transform_indices = @transform_3, window_bounds = array<i64: 128, 128>}, {pipeline_mode = #tpu.pipeline_mode<synchronous>, transform_indices = @transform_4, window_bounds = array<i64: 1, 128>}, {pipeline_mode = #tpu.pipeline_mode<synchronous>, transform_indices = @transform_5, window_bounds = array<i64: 128, 128>}, {pipeline_mode = #tpu.pipeline_mode<synchronous>, transform_indices = @transform_6, window_bounds = array<i64: 1, 128>}, {pipeline_mode = #tpu.pipeline_mode<synchronous>, transform_indices = @transform_7, window_bounds = array<i64: 128, 128>}, {pipeline_mode = #tpu.pipeline_mode<synchronous>, transform_indices = @transform_8, window_bounds = array<i64: 1, 128>}, {pipeline_mode = #tpu.pipeline_mode<synchronous>, transform_indices = @transform_9, window_bounds = array<i64: 128, 8>}, {pipeline_mode = #tpu.pipeline_mode<synchronous>, transform_indices = @transform_10, window_bounds = array<i64: 1, 8>}, {transform_indices = @transform_11, window_bounds = array<i64: 256, 8>}]} {
    %c0 = arith.constant 0 : index
    %c0_0 = arith.constant 0 : index
    %0 = vector.load %arg1[%c0, %c0_0] : memref<256x16xf32, #tpu.memory_space<vmem>>, vector<256x16xf32>
    %1 = arith.truncf %0 : vector<256x16xf32> to vector<256x16xbf16>
    %c0_1 = arith.constant 0 : index
    %c0_2 = arith.constant 0 : index
    %2 = vector.load %arg2[%c0_1, %c0_2] : memref<16x128xbf16, #tpu.memory_space<vmem>>, vector<16x128xbf16>
    %cst = arith.constant dense<0.000000e+00> : vector<256x128xf32>
    %3 = tpu.matmul %1, %2, %cst {dimension_numbers = #tpu.dot_dimension_numbers<[1], [0], [0], [1], [0, 0, 1, 1], [], []>} : vector<256x16xbf16>, vector<16x128xbf16>, vector<256x128xf32> -> vector<256x128xf32>
    %c0_3 = arith.constant 0 : index
    %c0_4 = arith.constant 0 : index
    %4 = vector.load %arg3[%c0_3, %c0_4] : memref<1x128xf32, #tpu.memory_space<vmem>>, vector<1x128xf32>
    %5 = vector.broadcast %4 : vector<1x128xf32> to vector<256x128xf32>
    %6 = arith.addf %3, %5 : vector<256x128xf32>
    %cst_5 = arith.constant 0.000000e+00 : f32
    %7 = vector.broadcast %cst_5 : f32 to vector<256x128xf32>
    %8 = arith.maximumf %6, %7 : vector<256x128xf32>
    %9 = arith.truncf %8 : vector<256x128xf32> to vector<256x128xbf16>
    %c0_6 = arith.constant 0 : index
    %c0_7 = arith.constant 0 : index
    %10 = vector.load %arg4[%c0_6, %c0_7] : memref<128x128xbf16, #tpu.memory_space<vmem>>, vector<128x128xbf16>
    %cst_8 = arith.constant dense<0.000000e+00> : vector<256x128xf32>
    %11 = tpu.matmul %9, %10, %cst_8 {dimension_numbers = #tpu.dot_dimension_numbers<[1], [0], [0], [1], [0, 0, 1, 1], [], []>} : vector<256x128xbf16>, vector<128x128xbf16>, vector<256x128xf32> -> vector<256x128xf32>
    %c0_9 = arith.constant 0 : index
    %c0_10 = arith.constant 0 : index
    %12 = vector.load %arg5[%c0_9, %c0_10] : memref<1x128xf32, #tpu.memory_space<vmem>>, vector<1x128xf32>
    %13 = vector.broadcast %12 : vector<1x128xf32> to vector<256x128xf32>
    %14 = arith.addf %11, %13 : vector<256x128xf32>
    %cst_11 = arith.constant 0.000000e+00 : f32
    %15 = vector.broadcast %cst_11 : f32 to vector<256x128xf32>
    %16 = arith.maximumf %14, %15 : vector<256x128xf32>
    %17 = arith.truncf %16 : vector<256x128xf32> to vector<256x128xbf16>
    %c0_12 = arith.constant 0 : index
    %c0_13 = arith.constant 0 : index
    %18 = vector.load %arg6[%c0_12, %c0_13] : memref<128x128xbf16, #tpu.memory_space<vmem>>, vector<128x128xbf16>
    %cst_14 = arith.constant dense<0.000000e+00> : vector<256x128xf32>
    %19 = tpu.matmul %17, %18, %cst_14 {dimension_numbers = #tpu.dot_dimension_numbers<[1], [0], [0], [1], [0, 0, 1, 1], [], []>} : vector<256x128xbf16>, vector<128x128xbf16>, vector<256x128xf32> -> vector<256x128xf32>
    %c0_15 = arith.constant 0 : index
    %c0_16 = arith.constant 0 : index
    %20 = vector.load %arg7[%c0_15, %c0_16] : memref<1x128xf32, #tpu.memory_space<vmem>>, vector<1x128xf32>
    %21 = vector.broadcast %20 : vector<1x128xf32> to vector<256x128xf32>
    %22 = arith.addf %19, %21 : vector<256x128xf32>
    %cst_17 = arith.constant 0.000000e+00 : f32
    %23 = vector.broadcast %cst_17 : f32 to vector<256x128xf32>
    %24 = arith.maximumf %22, %23 : vector<256x128xf32>
    %25 = arith.truncf %24 : vector<256x128xf32> to vector<256x128xbf16>
    %c0_18 = arith.constant 0 : index
    %c0_19 = arith.constant 0 : index
    %26 = vector.load %arg8[%c0_18, %c0_19] : memref<128x128xbf16, #tpu.memory_space<vmem>>, vector<128x128xbf16>
    %cst_20 = arith.constant dense<0.000000e+00> : vector<256x128xf32>
    %27 = tpu.matmul %25, %26, %cst_20 {dimension_numbers = #tpu.dot_dimension_numbers<[1], [0], [0], [1], [0, 0, 1, 1], [], []>} : vector<256x128xbf16>, vector<128x128xbf16>, vector<256x128xf32> -> vector<256x128xf32>
    %c0_21 = arith.constant 0 : index
    %c0_22 = arith.constant 0 : index
    %28 = vector.load %arg9[%c0_21, %c0_22] : memref<1x128xf32, #tpu.memory_space<vmem>>, vector<1x128xf32>
    %29 = vector.broadcast %28 : vector<1x128xf32> to vector<256x128xf32>
    %30 = arith.addf %27, %29 : vector<256x128xf32>
    %cst_23 = arith.constant 0.000000e+00 : f32
    %31 = vector.broadcast %cst_23 : f32 to vector<256x128xf32>
    %32 = arith.maximumf %30, %31 : vector<256x128xf32>
    %33 = arith.truncf %32 : vector<256x128xf32> to vector<256x128xbf16>
    %c0_24 = arith.constant 0 : index
    %c0_25 = arith.constant 0 : index
    %34 = vector.load %arg10[%c0_24, %c0_25] : memref<128x8xbf16, #tpu.memory_space<vmem>>, vector<128x8xbf16>
    %cst_26 = arith.constant dense<0.000000e+00> : vector<256x8xf32>
    %35 = tpu.matmul %33, %34, %cst_26 {dimension_numbers = #tpu.dot_dimension_numbers<[1], [0], [0], [1], [0, 0, 1, 1], [], []>} : vector<256x128xbf16>, vector<128x8xbf16>, vector<256x8xf32> -> vector<256x8xf32>
    %c0_27 = arith.constant 0 : index
    %c0_28 = arith.constant 0 : index
    %36 = vector.load %arg11[%c0_27, %c0_28] : memref<1x8xf32, #tpu.memory_space<vmem>>, vector<1x8xf32>
    %37 = vector.broadcast %36 : vector<1x8xf32> to vector<256x8xf32>
    %38 = arith.addf %35, %37 : vector<256x8xf32>
    %cst_29 = arith.constant 0.000000e+00 : f32
    %39 = vector.broadcast %cst_29 : f32 to vector<256x8xf32>
    %40 = arith.maximumf %38, %39 : vector<256x8xf32>
    %c0_30 = arith.constant 0 : index
    %c0_31 = arith.constant 0 : index
    %41 = vector.load %arg12[%c0_30, %c0_31] : memref<256x8xf32, #tpu.memory_space<vmem>>, vector<256x8xf32>
    tpu.vector_store %arg12[%c0_30, %c0_31], %40 {strides = array<i32>} : memref<256x8xf32, #tpu.memory_space<vmem>>, vector<256x8xf32>,
    return
  }
  func.func @transform_0(%arg0: i32) -> (i32, i32) {
    %c0_i32 = arith.constant 0 : i32
    %c0_i32_0 = arith.constant 0 : i32
    return %arg0, %c0_i32 : i32, i32
  }
  func.func @transform_1(%arg0: i32) -> (i32, i32) {
    %c0_i32 = arith.constant 0 : i32
    %c0_i32_0 = arith.constant 0 : i32
    %c0_i32_1 = arith.constant 0 : i32
    return %c0_i32, %c0_i32_0 : i32, i32
  }
  func.func @transform_2(%arg0: i32) -> (i32, i32) {
    %c0_i32 = arith.constant 0 : i32
    %c0_i32_0 = arith.constant 0 : i32
    %c0_i32_1 = arith.constant 0 : i32
    return %c0_i32, %c0_i32_0 : i32, i32
  }
  func.func @transform_3(%arg0: i32) -> (i32, i32) {
    %c0_i32 = arith.constant 0 : i32
    %c0_i32_0 = arith.constant 0 : i32
    %c0_i32_1 = arith.constant 0 : i32
    return %c0_i32, %c0_i32_0 : i32, i32
  }
  func.func @transform_4(%arg0: i32) -> (i32, i32) {
    %c0_i32 = arith.constant 0 : i32
    %c0_i32_0 = arith.constant 0 : i32
    %c0_i32_1 = arith.constant 0 : i32
    return %c0_i32, %c0_i32_0 : i32, i32
  }
  func.func @transform_5(%arg0: i32) -> (i32, i32) {
    %c0_i32 = arith.constant 0 : i32
    %c0_i32_0 = arith.constant 0 : i32
    %c0_i32_1 = arith.constant 0 : i32
    return %c0_i32, %c0_i32_0 : i32, i32
  }
  func.func @transform_6(%arg0: i32) -> (i32, i32) {
    %c0_i32 = arith.constant 0 : i32
    %c0_i32_0 = arith.constant 0 : i32
    %c0_i32_1 = arith.constant 0 : i32
    return %c0_i32, %c0_i32_0 : i32, i32
  }
  func.func @transform_7(%arg0: i32) -> (i32, i32) {
    %c0_i32 = arith.constant 0 : i32
    %c0_i32_0 = arith.constant 0 : i32
    %c0_i32_1 = arith.constant 0 : i32
    return %c0_i32, %c0_i32_0 : i32, i32
  }
  func.func @transform_8(%arg0: i32) -> (i32, i32) {
    %c0_i32 = arith.constant 0 : i32
    %c0_i32_0 = arith.constant 0 : i32
    %c0_i32_1 = arith.constant 0 : i32
    return %c0_i32, %c0_i32_0 : i32, i32
  }
  func.func @transform_9(%arg0: i32) -> (i32, i32) {
    %c0_i32 = arith.constant 0 : i32
    %c0_i32_0 = arith.constant 0 : i32
    %c0_i32_1 = arith.constant 0 : i32
    return %c0_i32, %c0_i32_0 : i32, i32
  }
  func.func @transform_10(%arg0: i32) -> (i32, i32) {
    %c0_i32 = arith.constant 0 : i32
    %c0_i32_0 = arith.constant 0 : i32
    %c0_i32_1 = arith.constant 0 : i32
    return %c0_i32, %c0_i32_0 : i32, i32
  }
  func.func @transform_11(%arg0: i32) -> (i32, i32) {
    %c0_i32 = arith.constant 0 : i32
    %c0_i32_0 = arith.constant 0 : i32
    return %arg0, %c0_i32 : i32, i32
  }
}

</mosaic_0001>

<bundles_post_ra>
// kernel: tpu_custom_call.1
= control target key start
LH: loop header
LB: loop body
LE: loop exit
PB: predicated region body
PF: predicated region fallthrough
CT: control target
= control target key end

     0   :  { %s2420_s17 = smov 0   ;;  %s2850_s0 = inlined_call_operand.vmem [shape: f32[512,16], index: 0, kind: input, shape index: {}]   ;;  %s2851_s1 = inlined_call_operand.vmem [shape: bf16[16,128], index: 1, kind: input, shape index: {}]   ;;  %s2852_s2 = inlined_call_operand.vmem [shape: f32[1,128], index: 2, kind: input, shape index: {}]   ;;  %s2853_s3 = inlined_call_operand.vmem [shape: bf16[128,128], index: 3, kind: input, shape index: {}]   ;;  %s2854_s4 = inlined_call_operand.vmem [shape: f32[1,128], index: 4, kind: input, shape index: {}]   ;;  %s2855_s5 = inlined_call_operand.vmem [shape: bf16[128,128], index: 5, kind: input, shape index: {}]   ;;  %s2856_s6 = inlined_call_operand.vmem [shape: f32[1,128], index: 6, kind: input, shape index: {}]   ;;  %s2857_s7 = inlined_call_operand.vmem [shape: bf16[128,128], index: 7, kind: input, shape index: {}]   ;;  %s2858_s8 = inlined_call_operand.vmem [shape: f32[1,128], index: 8, kind: input, shape index: {}]   ;;  %s2859_s9 = inlined_call_operand.vmem [shape: bf16[128,8], index: 9, kind: input, shape index: {}]   ;;  %s2860_s10 = inlined_call_operand.vmem [shape: f32[1,8], index: 10, kind: input, shape index: {}]   ;;  %s2861_s11 = inlined_call_operand.vmem [shape: f32[512,8], index: 11, kind: output, shape index: {}]  }
   0x1 LB: > { %s1905_s18 = sadd.s32 4294967295, %s2358_s17   ;;  %p1909_p0 = scmp.ge.s32.totalorder %s2358_s17, 1  ;;  %s2358_s17 = sphi %s2420_s17, %s21_s17  }
   0x2   : > { %p338_p1 = scmp.lt.s32.totalorder %s2358_s17, 3 }
   0x4   : > { %p339_p2 = pnand %p1909_p0, %p338_p1 }
   0x5   : > { %v2319_v0 = vld [vmem:[%s2851_s1] sm:$0xff] (!%p339_p2)   ;;  %s1910_s21 = sshll.u32 (!%p339_p2), %s1905_s18, 5  ;;  %vm454_vm0 = vcmask (!%p339_p2), 130048   ;;  %v2321_v23 = vld [vmem:[%s2853_s3 + $0x8] sm:$0xff] (!%p339_p2)   ;;  %v2322_v28 = vld [vmem:[%s2853_s3 + $0x10] sm:$0xff] (!%p339_p2)   ;;  %vm1816_vm1 = vcmask (!%p339_p2), 64512  }
   0x6   : > { %342 = sbr.rel (%p339_p2) target bundleno = 1184 (0x4a0), region = 64  ;;  %p379_p3 = scmp.lt.s32.totalorder (!%p339_p2), %s1910_s21, 63  ;;  %2083 = vmatprep.subr.bf16.mxu0 (!%p339_p2), %v2319_v0  ;;  %2309 = vmatprep.subr.bf16.mxu1 (!%p339_p2), %v2319_v0  ;;  %v2320_v1 = vld [vmem:[%s2853_s3] sm:$0xff] (!%p339_p2)   ;;  %v2323_v37 = vld [vmem:[%s2853_s3 + $0x18] sm:$0xff] (!%p339_p2)   ;;  %v2325_v49 = vld [vmem:[%s2853_s3 + $0x28] sm:$0xff] (!%p339_p2)  }
   0x7   : > { %2084 = vmatpush3.bf16.msra.mxu0 (!%p339_p2), %v2319_v0  ;;  %2310 = vmatpush3.bf16.msra.mxu1 (!%p339_p2), %v2319_v0  ;;  %v2324_v45 = vld [vmem:[%s2853_s3 + $0x20] sm:$0xff] (!%p339_p2)   ;;  %v2326_v55 = vld [vmem:[%s2853_s3 + $0x30] sm:$0xff] (!%p339_p2)   ;;  %v2327_v56 = vld [vmem:[%s2853_s3 + $0x38] sm:$0xff] (!%p339_p2)  }
   0x8   : > { %2117 = vmatprep.subr.bf16.mxu1 (!%p339_p2), %v2320_v1  ;;  %v2328_v57 = vld [vmem:[%s2855_s5] sm:$0xff] (!%p339_p2)   ;;  %v2329_v58 = vld [vmem:[%s2855_s5 + $0x8] sm:$0xff] (!%p339_p2)   ;;  %v2330_v59 = vld [vmem:[%s2855_s5 + $0x10] sm:$0xff] (!%p339_p2)  }
   0x9   : > { %2165 = vmatprep.subr.bf16.mxu0 (!%p339_p2), %v2328_v57  ;;  %v2331_v60 = vld [vmem:[%s2855_s5 + $0x18] sm:$0xff] (!%p339_p2)   ;;  %v2332_v61 = vld [vmem:[%s2855_s5 + $0x20] sm:$0xff] (!%p339_p2)   ;;  %v2333_v62 = vld [vmem:[%s2855_s5 + $0x28] sm:$0xff] (!%p339_p2)  }
   0xa   : > { %v2534_v63 = vld [vmem:[%s2852_s2] ss:$0 sm:$0xff] (!%p339_p2) }
   0xd   : > { %s2863_s21 = smov (!%p379_p3, %s1910_s21), 63 }
   0xe   : > { %s1911_s24 = sshll.u32 %s2863_s21, 3 }
   0xf   : > { %s2442_s27 = scalar_lea.vmem %s2850_s0, %s1911_s24  ;;  %s2750_s20 = scalar_lea.vmem %s2861_s11, %s1911_s24 }
  0x10   : > { %v391_v2 = vld [vmem:[%s2442_s27] sm:$0xff]  ;;  %v392_v3 = vld [vmem:[%s2442_s27 + $0x8] sm:$0xff]  ;;  %v393_v4 = vld [vmem:[%s2442_s27 + $0x10] sm:$0xff] }
  0x11   : > { %v423_v5 = vpack.c.bf16 %v392_v3, %v391_v2  ;;  %v394_v6 = vld [vmem:[%s2442_s27 + $0x18] sm:$0xff]  ;;  %v395_v7 = vld [vmem:[%s2442_s27 + $0x20] sm:$0xff]  ;;  %v396_v8 = vld [vmem:[%s2442_s27 + $0x28] sm:$0xff] }
  0x12   : > { %v424_v9 = vpack.c.bf16 %v394_v6, %v393_v4  ;;  %v425_v10 = vpack.c.bf16 %v396_v8, %v395_v7  ;;  %v397_v11 = vld [vmem:[%s2442_s27 + $0x30] sm:$0xff]  ;;  %v398_v12 = vld [vmem:[%s2442_s27 + $0x38] sm:$0xff]  ;;  %v399_v13 = vld [vmem:[%s2442_s27 + $0x40] sm:$0xff] }
  0x13   : > { %2085 = vmatprep.mubr.msk.bf16.mxu0 %vm454_vm0, %v423_v5  ;;  %v400_v14 = vld [vmem:[%s2442_s27 + $0x48] sm:$0xff]  ;;  %v407_v15 = vld [vmem:[%s2442_s27 + $0x80] sm:$0xff]  ;;  %v409_v18 = vld [vmem:[%s2442_s27 + $0x90] sm:$0xff]  ;;  %v426_v24 = vpack.c.bf16 %v398_v12, %v397_v11 }
  0x14   : > { %2086 = vmatmul.mubr.msk.bf16.vlgmr.msra.gmra.mrb[0].mxu0 %vm454_vm0, %v424_v9  ;;  %v408_v16 = vld [vmem:[%s2442_s27 + $0x88] sm:$0xff]  ;;  %v410_v19 = vld [vmem:[%s2442_s27 + $0x98] sm:$0xff]  ;;  %v411_v20 = vld [vmem:[%s2442_s27 + $0xa0] sm:$0xff]  ;;  %v427_v26 = vpack.c.bf16 %v400_v14, %v399_v13 }
  0x15   : > { %2089 = vmatprep.mubr.msk.bf16.mxu0 %vm454_vm0, %v425_v10  ;;  %v431_v17 = vpack.c.bf16 %v408_v16, %v407_v15  ;;  %v432_v21 = vpack.c.bf16 %v410_v19, %v409_v18  ;;  %v412_v22 = vld [vmem:[%s2442_s27 + $0xa8] sm:$0xff]  ;;  %v413_v27 = vld [vmem:[%s2442_s27 + $0xb0] sm:$0xff]  ;;  %v414_v29 = vld [vmem:[%s2442_s27 + $0xb8] sm:$0xff]  ;;  %2166 = vmatpush3.bf16.msra.mxu0 %v2328_v57 }
  0x16   : > { %v433_v25 = vpack.c.bf16 %v412_v22, %v411_v20  ;;  %v415_v30 = vld [vmem:[%s2442_s27 + $0xc0] sm:$0xff]  ;;  %v416_v31 = vld [vmem:[%s2442_s27 + $0xc8] sm:$0xff]  ;;  %v401_v32 = vld [vmem:[%s2442_s27 + $0x50] sm:$0xff]  ;;  %v434_v36 = vpack.c.bf16 %v414_v29, %v413_v27  ;;  %2167 = vmatprep.subr.bf16.mxu0 %v2329_v58 }
  0x17   : > { %2101 = vmatprep.mubr.msk.bf16.mxu1 %vm454_vm0, %v431_v17  ;;  %v402_v33 = vld [vmem:[%s2442_s27 + $0x58] sm:$0xff]  ;;  %v403_v34 = vld [vmem:[%s2442_s27 + $0x60] sm:$0xff]  ;;  %v404_v35 = vld [vmem:[%s2442_s27 + $0x68] sm:$0xff]  ;;  %v435_v38 = vpack.c.bf16 %v416_v31, %v415_v30 }
  0x18   : > { %2102 = vmatmul.mubr.msk.bf16.vlgmr.msra.gmra.mrb[0].mxu1 %vm454_vm0, %v432_v21  ;;  %v428_v39 = vpack.c.bf16 %v402_v33, %v401_v32  ;;  %v417_v40 = vld [vmem:[%s2442_s27 + $0xd0] sm:$0xff]  ;;  %v418_v41 = vld [vmem:[%s2442_s27 + $0xd8] sm:$0xff]  ;;  %v429_v42 = vpack.c.bf16 %v404_v35, %v403_v34  ;;  %v419_v43 = vld [vmem:[%s2442_s27 + $0xe0] sm:$0xff] }
  0x19   : > { %2105 = vmatprep.mubr.msk.bf16.mxu1 %vm454_vm0, %v433_v25  ;;  %2118 = vmatpush3.bf16.msra.mxu1 %v2320_v1  ;;  %v420_v44 = vld [vmem:[%s2442_s27 + $0xe8] sm:$0xff]  ;;  %v405_v46 = vld [vmem:[%s2442_s27 + $0x70] sm:$0xff]  ;;  %v406_v47 = vld [vmem:[%s2442_s27 + $0x78] sm:$0xff]  ;;  %v436_v48 = vpack.c.bf16 %v418_v41, %v417_v40 }
  0x1a   : > { %2119 = vmatprep.subr.bf16.mxu1 %v2321_v23  ;;  %v437_v50 = vpack.c.bf16 %v420_v44, %v419_v43  ;;  %v430_v51 = vpack.c.bf16 %v406_v47, %v405_v46  ;;  %v421_v52 = vld [vmem:[%s2442_s27 + $0xf0] sm:$0xff]  ;;  %v422_v53 = vld [vmem:[%s2442_s27 + $0xf8] sm:$0xff]  ;;  %2168 = vmatpush3.bf16.msra.mxu0 %v2329_v58 }
  0x1b   : > { %v438_v54 = vpack.c.bf16 %v422_v53, %v421_v52  ;;  %2169 = vmatprep.subr.bf16.mxu0 %v2330_v59 }
  0x1c   : > { %2090 = vmatmul.mubr.msk.bf16.gmra.mrb[4].mxu0 %vm454_vm0, %v426_v24 }
  0x1d   : > { %2093 = vmatprep.mubr.msk.bf16.mxu0 %vm454_vm0, %v427_v26  ;;  %2120 = vmatpush3.bf16.msra.mxu1 %v2321_v23 }
  0x1e   : > { %2121 = vmatprep.subr.bf16.mxu1 %v2322_v28  ;;  %2170 = vmatpush3.bf16.msra.mxu0 %v2330_v59 }
  0x1f   : > { %2171 = vmatprep.subr.bf16.mxu0 %v2331_v60 }
  0x20   : > { %2106 = vmatmul.mubr.msk.bf16.gmra.mrb[4].mxu1 %vm454_vm0, %v434_v36 }
  0x21   : > { %2109 = vmatprep.mubr.msk.bf16.mxu1 %vm454_vm0, %v435_v38  ;;  %2122 = vmatpush3.bf16.msra.mxu1 %v2322_v28 }
  0x22   : > { %2123 = vmatprep.subr.bf16.mxu1 %v2323_v37  ;;  %2172 = vmatpush3.bf16.msra.mxu0 %v2331_v60 }
  0x23   : > { %2173 = vmatprep.subr.bf16.mxu0 %v2332_v61 }
  0x24   : > { %2094 = vmatmul.mubr.msk.bf16.gmra.mrb[8].mxu0 %vm454_vm0, %v428_v39 }
  0x25   : > { %2097 = vmatprep.mubr.msk.bf16.mxu0 %vm454_vm0, %v429_v42  ;;  %2124 = vmatpush3.bf16.msra.mxu1 %v2323_v37 }
  0x26   : > { %2125 = vmatprep.subr.bf16.mxu1 %v2324_v45  ;;  %2174 = vmatpush3.bf16.msra.mxu0 %v2332_v61 }
  0x27   : > { %2175 = vmatprep.subr.bf16.mxu0 %v2333_v62 }
  0x28   : > { %2110 = vmatmul.mubr.msk.bf16.gmra.mrb[8].mxu1 %vm454_vm0, %v436_v48 }
  0x29   : > { %2113 = vmatprep.mubr.msk.bf16.mxu1 %vm454_vm0, %v437_v50  ;;  %2126 = vmatpush3.bf16.msra.mxu1 %v2324_v45 }
  0x2a   : > { %2127 = vmatprep.subr.bf16.mxu1 %v2325_v49  ;;  %2176 = vmatpush3.bf16.msra.mxu0 %v2333_v62 }
  0x2c   : > { %2098 = vmatmul.mubr.msk.bf16.gmra.mrb[12].mxu0 %vm454_vm0, %v430_v51 }
  0x2d   : > { %2128 = vmatpush3.bf16.msra.mxu1 %v2325_v49 }
  0x2e   : > { %2129 = vmatprep.subr.bf16.mxu1 %v2326_v55 }
  0x30   : > { %2114 = vmatmul.mubr.msk.bf16.gmra.mrb[12].mxu1 %vm454_vm0, %v438_v54 }
  0x31   : > { %2130 = vmatpush3.bf16.msra.mxu1 %v2326_v55 }
  0x32   : > { %2131 = vmatprep.subr.bf16.mxu1 %v2327_v56 }
  0x35   : > { %2132 = vmatpush3.bf16.msra.mxu1 %v2327_v56 }
  0xe7   : > { %v2087_v0 = vpop.f32.mrb[0].mxu0 }
  0xe8   : > { %v546_v1 = vadd.f32 %v2087_v0, %v2534_v63  ;;  %v537_v2 = vpop.f32.mrb[1].mxu0 }
  0xe9   : > { %v538_v3 = vadd.f32 %v2534_v63, %v537_v2  ;;  %v2088_v4 = vpop.f32.mrb[2].mxu0 }
  0xea   : > { %v549_v5 = vadd.f32 %v2088_v4, %v2534_v63  ;;  %v540_v6 = vpop.f32.mrb[3].mxu0  ;;  %v666_v8 = vmax.f32 %v546_v1, 0.0 }
  0xeb   : > { %v541_v7 = vadd.f32 %v2534_v63, %v540_v6  ;;  %v2103_v10 = vpop.f32.mrb[0].mxu1  ;;  %v664_v11 = vmax.f32 %v538_v3, 0.0 }
  0xec   : > { %v667_v9 = vmax.f32 %v549_v5, 0.0  ;;  %v610_v13 = vadd.f32 %v2103_v10, %v2534_v63  ;;  %v601_v14 = vpop.f32.mrb[1].mxu1 }
  0xed   : > { %v665_v12 = vmax.f32 %v541_v7, 0.0  ;;  %v602_v16 = vadd.f32 %v2534_v63, %v601_v14  ;;  %v2104_v17 = vpop.f32.mrb[2].mxu1 }
  0xee   : > { %v697_v15 = vpack.c.bf16 %v667_v9, %v666_v8  ;;  %v682_v20 = vmax.f32 %v610_v13, 0.0  ;;  %v613_v21 = vadd.f32 %v2104_v17, %v2534_v63  ;;  %v604_v22 = vpop.f32.mrb[3].mxu1 }
  0xef   : > { %v696_v18 = vpack.c.bf16 %v665_v12, %v664_v11  ;;  %v2091_v19 = vpop.f32.mrb[4].mxu0  ;;  %v680_v25 = vmax.f32 %v602_v16, 0.0  ;;  %v605_v26 = vadd.f32 %v2534_v63, %v604_v22 }
  0xf0   : > { %v562_v23 = vadd.f32 %v2091_v19, %v2534_v63  ;;  %v553_v24 = vpop.f32.mrb[5].mxu0  ;;  %v683_v29 = vmax.f32 %v613_v21, 0.0 }
  0xf1   : > { %v554_v27 = vadd.f32 %v2534_v63, %v553_v24  ;;  %v2092_v28 = vpop.f32.mrb[6].mxu0  ;;  %2133 = vmatprep.mubr.bf16.mxu1 %v696_v18  ;;  %v681_v32 = vmax.f32 %v605_v26, 0.0 }
  0xf2   : > { %v565_v30 = vadd.f32 %v2092_v28, %v2534_v63  ;;  %v556_v31 = vpop.f32.mrb[7].mxu0  ;;  %2134 = vmatmul.mubr.bf16.vlgmr.msra.gmra.mrb[16].mxu1 %v697_v15  ;;  %v2548_v34 = vpack.c.bf16 %v683_v29, %v682_v20  ;;  %v670_v35 = vmax.f32 %v562_v23, 0.0 }
  0xf3   : > { %v557_v33 = vadd.f32 %v2534_v63, %v556_v31  ;;  %v2550_v37 = vpack.c.bf16 %v681_v32, %v680_v25  ;;  %v2107_v38 = vpop.f32.mrb[4].mxu1  ;;  %v668_v39 = vmax.f32 %v554_v27, 0.0 }
  0xf4   : > { %v671_v36 = vmax.f32 %v565_v30, 0.0  ;;  %v626_v41 = vadd.f32 %v2107_v38, %v2534_v63  ;;  %v617_v42 = vpop.f32.mrb[5].mxu1 }
  0xf5   : > { %v669_v40 = vmax.f32 %v557_v33, 0.0  ;;  %v618_v44 = vadd.f32 %v2534_v63, %v617_v42  ;;  %v2108_v45 = vpop.f32.mrb[6].mxu1 }
  0xf6   : > { %v699_v43 = vpack.c.bf16 %v671_v36, %v670_v35  ;;  %v686_v48 = vmax.f32 %v626_v41, 0.0  ;;  %v629_v49 = vadd.f32 %v2108_v45, %v2534_v63  ;;  %v620_v50 = vpop.f32.mrb[7].mxu1 }
  0xf7   : > { %v698_v46 = vpack.c.bf16 %v669_v40, %v668_v39  ;;  %v2095_v47 = vpop.f32.mrb[8].mxu0  ;;  %v684_v53 = vmax.f32 %v618_v44, 0.0  ;;  %v621_v54 = vadd.f32 %v2534_v63, %v620_v50 }
  0xf8   : > { %v578_v51 = vadd.f32 %v2095_v47, %v2534_v63  ;;  %v569_v52 = vpop.f32.mrb[9].mxu0  ;;  %v687_v57 = vmax.f32 %v629_v49, 0.0 }
  0xf9   : > { %v570_v55 = vadd.f32 %v2534_v63, %v569_v52  ;;  %v2096_v56 = vpop.f32.mrb[10].mxu0  ;;  %2137 = vmatprep.mubr.bf16.mxu1 %v698_v46  ;;  %v685_v60 = vmax.f32 %v621_v54, 0.0  ;;  %v2338_v52 = vld [vmem:[%s2857_s7 + $0x10] sm:$0xff]   ;;  %v2340_v54 = vld [vmem:[%s2857_s7 + $0x20] sm:$0xff]  }
  0xfa   : > { %v581_v58 = vadd.f32 %v2096_v56, %v2534_v63  ;;  %v572_v59 = vpop.f32.mrb[11].mxu0  ;;  %2138 = vmatmul.mubr.bf16.gmra.mrb[20].mxu1 %v699_v43  ;;  %v707_v62 = vpack.c.bf16 %v687_v57, %v686_v48  ;;  %v674_v0 = vmax.f32 %v578_v51, 0.0  ;;  %v2337_v51 = vld [vmem:[%s2857_s7 + $0x8] sm:$0xff]   ;;  %v2342_v56 = vld [vmem:[%s2857_s7 + $0x30] sm:$0xff]   ;;  %v2604_v57 = vld [vmem:[%s2854_s4] ss:$0 sm:$0xff] }
  0xfb   : > { %v573_v61 = vadd.f32 %v2534_v63, %v572_v59  ;;  %v706_v2 = vpack.c.bf16 %v685_v60, %v684_v53  ;;  %v2111_v3 = vpop.f32.mrb[8].mxu1  ;;  %v672_v4 = vmax.f32 %v570_v55, 0.0  ;;  %v2339_v53 = vld [vmem:[%s2857_s7 + $0x18] sm:$0xff]   ;;  %v2341_v55 = vld [vmem:[%s2857_s7 + $0x28] sm:$0xff]  }
  0xfc   : > { %v675_v1 = vmax.f32 %v581_v58, 0.0  ;;  %v642_v6 = vadd.f32 %v2111_v3, %v2534_v63  ;;  %v633_v7 = vpop.f32.mrb[9].mxu1 }
  0xfd   : > { %v673_v5 = vmax.f32 %v573_v61, 0.0  ;;  %v634_v9 = vadd.f32 %v2534_v63, %v633_v7  ;;  %v2112_v10 = vpop.f32.mrb[10].mxu1 }
  0xfe   : > { %v701_v8 = vpack.c.bf16 %v675_v1, %v674_v0  ;;  %v690_v13 = vmax.f32 %v642_v6, 0.0  ;;  %v645_v14 = vadd.f32 %v2112_v10, %v2534_v63  ;;  %v636_v15 = vpop.f32.mrb[11].mxu1 }
  0xff   : > { %v700_v11 = vpack.c.bf16 %v673_v5, %v672_v4  ;;  %v2099_v12 = vpop.f32.mrb[12].mxu0  ;;  %v688_v18 = vmax.f32 %v634_v9, 0.0  ;;  %v637_v19 = vadd.f32 %v2534_v63, %v636_v15 }
 0x100   : > { %v594_v16 = vadd.f32 %v2099_v12, %v2534_v63  ;;  %v585_v17 = vpop.f32.mrb[13].mxu0  ;;  %v691_v22 = vmax.f32 %v645_v14, 0.0 }
 0x101   : > { %v586_v20 = vadd.f32 %v2534_v63, %v585_v17  ;;  %v2100_v21 = vpop.f32.mrb[14].mxu0  ;;  %2141 = vmatprep.mubr.bf16.mxu1 %v700_v11  ;;  %v689_v25 = vmax.f32 %v637_v19, 0.0 }
 0x102   : > { %v597_v23 = vadd.f32 %v2100_v21, %v2534_v63  ;;  %v588_v24 = vpop.f32.mrb[15].mxu0  ;;  %2142 = vmatmul.mubr.bf16.gmra.mrb[24].mxu1 %v701_v8  ;;  %v709_v27 = vpack.c.bf16 %v691_v22, %v690_v13  ;;  %v678_v28 = vmax.f32 %v594_v16, 0.0 }
 0x103   : > { %v589_v26 = vadd.f32 %v2534_v63, %v588_v24  ;;  %v708_v30 = vpack.c.bf16 %v689_v25, %v688_v18  ;;  %v2115_v31 = vpop.f32.mrb[12].mxu1  ;;  %v676_v32 = vmax.f32 %v586_v20, 0.0 }
 0x104   : > { %v679_v29 = vmax.f32 %v597_v23, 0.0  ;;  %v658_v35 = vadd.f32 %v2115_v31, %v2534_v63  ;;  %v649_v36 = vpop.f32.mrb[13].mxu1 }
 0x105   : > { %v677_v33 = vmax.f32 %v589_v26, 0.0  ;;  %v650_v39 = vadd.f32 %v2534_v63, %v649_v36  ;;  %v2116_v40 = vpop.f32.mrb[14].mxu1 }
 0x106   : > { %v703_v38 = vpack.c.bf16 %v679_v29, %v678_v28  ;;  %v694_v42 = vmax.f32 %v658_v35, 0.0  ;;  %v661_v43 = vadd.f32 %v2116_v40, %v2534_v63  ;;  %v652_v44 = vpop.f32.mrb[15].mxu1 }
 0x107   : > { %v702_v41 = vpack.c.bf16 %v677_v33, %v676_v32  ;;  %v692_v45 = vmax.f32 %v650_v39, 0.0  ;;  %v653_v46 = vadd.f32 %v2534_v63, %v652_v44  ;;  %v2334_v63 = vld [vmem:[%s2855_s5 + $0x30] sm:$0xff]  }
 0x108   : > { %v695_v47 = vmax.f32 %v661_v43, 0.0  ;;  %2177 = vmatprep.subr.bf16.mxu0 %v2334_v63 }
 0x109   : > { %2145 = vmatprep.mubr.bf16.mxu1 %v702_v41  ;;  %v693_v48 = vmax.f32 %v653_v46, 0.0  ;;  %2178 = vmatpush3.bf16.msra.mxu0 %v2334_v63 }
 0x10a   : > { %2146 = vmatmul.mubr.bf16.gmra.mrb[28].mxu1 %v703_v38  ;;  %v711_v49 = vpack.c.bf16 %v695_v47, %v694_v42 }
 0x10b   : > { %2149 = vmatprep.mubr.bf16.mxu1 %v2550_v37  ;;  %v710_v50 = vpack.c.bf16 %v693_v48, %v692_v45  ;;  %v2335_v37 = vld [vmem:[%s2855_s5 + $0x38] sm:$0xff]  }
 0x10c   : > { %2179 = vmatprep.subr.bf16.mxu0 %v2335_v37 }
 0x10d   : > { %2180 = vmatpush3.bf16.msra.mxu0 %v2335_v37 }
 0x112   : > { %2150 = vmatmul.mubr.bf16.gmra.mrb[32].mxu1 %v2548_v34  ;;  %v2336_v34 = vld [vmem:[%s2857_s7] sm:$0xff]  }
 0x113   : > { %2153 = vmatprep.mubr.bf16.mxu1 %v706_v2  ;;  %2213 = vmatprep.subr.bf16.mxu1 %v2336_v34 }
 0x114   : > { %2214 = vmatpush3.bf16.msra.mxu1 %v2336_v34 }
 0x115   : > { %2215 = vmatprep.subr.bf16.mxu1 %v2337_v51 }
 0x118   : > { %2216 = vmatpush3.bf16.msra.mxu1 %v2337_v51 }
 0x119   : > { %2217 = vmatprep.subr.bf16.mxu1 %v2338_v52 }
 0x11a   : > { %2154 = vmatmul.mubr.bf16.gmra.mrb[36].mxu1 %v707_v62 }
 0x11b   : > { %2157 = vmatprep.mubr.bf16.mxu1 %v708_v30 }
 0x11c   : > { %2218 = vmatpush3.bf16.msra.mxu1 %v2338_v52 }
 0x11d   : > { %2219 = vmatprep.subr.bf16.mxu1 %v2339_v53 }
 0x120   : > { %2220 = vmatpush3.bf16.msra.mxu1 %v2339_v53 }
 0x121   : > { %2221 = vmatprep.subr.bf16.mxu1 %v2340_v54 }
 0x122   : > { %2158 = vmatmul.mubr.bf16.gmra.mrb[40].mxu1 %v709_v27 }
 0x123   : > { %2161 = vmatprep.mubr.bf16.mxu1 %v710_v50 }
 0x124   : > { %2222 = vmatpush3.bf16.msra.mxu1 %v2340_v54 }
 0x125   : > { %2223 = vmatprep.subr.bf16.mxu1 %v2341_v55 }
 0x128   : > { %2224 = vmatpush3.bf16.msra.mxu1 %v2341_v55 }
 0x129   : > { %2225 = vmatprep.subr.bf16.mxu1 %v2342_v56 }
 0x12a   : > { %2162 = vmatmul.mubr.bf16.gmra.mrb[44].mxu1 %v711_v49 }
 0x12c   : > { %2226 = vmatpush3.bf16.msra.mxu1 %v2342_v56 }
 0x1c5   : > { %v2135_v58 = vpop.f32.mrb[16].mxu1 }
 0x1c6   : > { %v826_v59 = vadd.f32 %v2135_v58, %v2604_v57  ;;  %v817_v60 = vpop.f32.mrb[17].mxu1 }
 0x1c7   : > { %v818_v61 = vadd.f32 %v2604_v57, %v817_v60  ;;  %v2136_v62 = vpop.f32.mrb[18].mxu1 }
 0x1c8   : > { %v829_v0 = vadd.f32 %v2136_v62, %v2604_v57  ;;  %v820_v1 = vpop.f32.mrb[19].mxu1  ;;  %v946_v3 = vmax.f32 %v826_v59, 0.0 }
 0x1c9   : > { %v821_v2 = vadd.f32 %v2604_v57, %v820_v1  ;;  %v944_v5 = vmax.f32 %v818_v61, 0.0 }
 0x1ca   : > { %v947_v4 = vmax.f32 %v829_v0, 0.0 }
 0x1cb   : > { %v945_v6 = vmax.f32 %v821_v2, 0.0 }
 0x1cc   : > { %v977_v7 = vpack.c.bf16 %v947_v4, %v946_v3 }
 0x1cd   : > { %v976_v8 = vpack.c.bf16 %v945_v6, %v944_v5  ;;  %v2139_v9 = vpop.f32.mrb[20].mxu1 }
 0x1ce   : > { %v842_v10 = vadd.f32 %v2139_v9, %v2604_v57  ;;  %v833_v11 = vpop.f32.mrb[21].mxu1 }
 0x1cf   : > { %v834_v12 = vadd.f32 %v2604_v57, %v833_v11  ;;  %v2140_v13 = vpop.f32.mrb[22].mxu1  ;;  %2181 = vmatprep.mubr.bf16.mxu0 %v976_v8 }
 0x1d0   : > { %v845_v14 = vadd.f32 %v2140_v13, %v2604_v57  ;;  %v836_v15 = vpop.f32.mrb[23].mxu1  ;;  %2182 = vmatmul.mubr.bf16.vlgmr.msra.gmra.mrb[16].mxu0 %v977_v7  ;;  %v950_v17 = vmax.f32 %v842_v10, 0.0 }
 0x1d1   : > { %v837_v16 = vadd.f32 %v2604_v57, %v836_v15  ;;  %v948_v19 = vmax.f32 %v834_v12, 0.0 }
 0x1d2   : > { %v951_v18 = vmax.f32 %v845_v14, 0.0 }
 0x1d3   : > { %v949_v20 = vmax.f32 %v837_v16, 0.0 }
 0x1d4   : > { %v979_v21 = vpack.c.bf16 %v951_v18, %v950_v17 }
 0x1d5   : > { %v978_v22 = vpack.c.bf16 %v949_v20, %v948_v19  ;;  %v2143_v23 = vpop.f32.mrb[24].mxu1 }
 0x1d6   : > { %v858_v24 = vadd.f32 %v2143_v23, %v2604_v57  ;;  %v849_v25 = vpop.f32.mrb[25].mxu1 }
 0x1d7   : > { %v850_v26 = vadd.f32 %v2604_v57, %v849_v25  ;;  %v2144_v27 = vpop.f32.mrb[26].mxu1  ;;  %2185 = vmatprep.mubr.bf16.mxu0 %v978_v22 }
 0x1d8   : > { %v861_v28 = vadd.f32 %v2144_v27, %v2604_v57  ;;  %v852_v29 = vpop.f32.mrb[27].mxu1  ;;  %2186 = vmatmul.mubr.bf16.gmra.mrb[20].mxu0 %v979_v21  ;;  %v954_v31 = vmax.f32 %v858_v24, 0.0 }
 0x1d9   : > { %v853_v30 = vadd.f32 %v2604_v57, %v852_v29  ;;  %v952_v33 = vmax.f32 %v850_v26, 0.0 }
 0x1da   : > { %v955_v32 = vmax.f32 %v861_v28, 0.0 }
 0x1db   : > { %v953_v35 = vmax.f32 %v853_v30, 0.0 }
 0x1dc   : > { %v981_v36 = vpack.c.bf16 %v955_v32, %v954_v31 }
 0x1dd   : > { %v980_v38 = vpack.c.bf16 %v953_v35, %v952_v33  ;;  %v2147_v39 = vpop.f32.mrb[28].mxu1 }
 0x1de   : > { %v874_v40 = vadd.f32 %v2147_v39, %v2604_v57  ;;  %v865_v41 = vpop.f32.mrb[29].mxu1 }
 0x1df   : > { %v866_v42 = vadd.f32 %v2604_v57, %v865_v41  ;;  %v2148_v43 = vpop.f32.mrb[30].mxu1  ;;  %2189 = vmatprep.mubr.bf16.mxu0 %v980_v38 }
 0x1e0   : > { %v877_v44 = vadd.f32 %v2148_v43, %v2604_v57  ;;  %v868_v45 = vpop.f32.mrb[31].mxu1  ;;  %2190 = vmatmul.mubr.bf16.gmra.mrb[24].mxu0 %v981_v36  ;;  %v958_v47 = vmax.f32 %v874_v40, 0.0 }
 0x1e1   : > { %v869_v46 = vadd.f32 %v2604_v57, %v868_v45  ;;  %v956_v49 = vmax.f32 %v866_v42, 0.0 }
 0x1e2   : > { %v959_v48 = vmax.f32 %v877_v44, 0.0 }
 0x1e3   : > { %v957_v50 = vmax.f32 %v869_v46, 0.0  ;;  %v2343_v46 = vld [vmem:[%s2857_s7 + $0x38] sm:$0xff]  }
 0x1e4   : > { %v983_v63 = vpack.c.bf16 %v959_v48, %v958_v47  ;;  %2227 = vmatprep.subr.bf16.mxu1 %v2343_v46  ;;  %v2344_v47 = vld [vmem:[%s2859_s9] sm:$0xff]   ;;  %v2346_v48 = vld [vmem:[%s2859_s9 + $0x10] sm:$0xff]  }
 0x1e5   : > { %v982_v37 = vpack.c.bf16 %v957_v50, %v956_v49  ;;  %v2151_v34 = vpop.f32.mrb[32].mxu1  ;;  %2228 = vmatpush3.bf16.msra.mxu1 %v2343_v46  ;;  %2261 = vmatprep.subr.bf16.mxu0 %v2344_v47  ;;  %v2347_v49 = vld [vmem:[%s2859_s9 + $0x18] sm:$0xff]   ;;  %v2348_v50 = vld [vmem:[%s2859_s9 + $0x20] sm:$0xff]  }
 0x1e6   : > { %v890_v51 = vadd.f32 %v2151_v34, %v2604_v57  ;;  %v881_v52 = vpop.f32.mrb[33].mxu1  ;;  %2262 = vmatpush3.bf16.msra.mxu0 %v2344_v47  ;;  %v2665_v34 = vld [vmem:[%s2856_s6] ss:$0 sm:$0xff] }
 0x1e7   : > { %v882_v53 = vadd.f32 %v2604_v57, %v881_v52  ;;  %v2152_v54 = vpop.f32.mrb[34].mxu1  ;;  %2193 = vmatprep.mubr.bf16.mxu0 %v982_v37  ;;  %v2350_v37 = vld [vmem:[%s2859_s9 + $0x30] sm:$0xff]  }
 0x1e8   : > { %v893_v55 = vadd.f32 %v2152_v54, %v2604_v57  ;;  %v884_v56 = vpop.f32.mrb[35].mxu1  ;;  %2194 = vmatmul.mubr.bf16.gmra.mrb[28].mxu0 %v983_v63  ;;  %v962_v59 = vmax.f32 %v890_v51, 0.0  ;;  %v2349_v63 = vld [vmem:[%s2859_s9 + $0x28] sm:$0xff]  }
 0x1e9   : > { %v885_v58 = vadd.f32 %v2604_v57, %v884_v56  ;;  %v960_v61 = vmax.f32 %v882_v53, 0.0 }
 0x1ea   : > { %v963_v60 = vmax.f32 %v893_v55, 0.0 }
 0x1eb   : > { %v961_v62 = vmax.f32 %v885_v58, 0.0 }
 0x1ec   : > { %v985_v0 = vpack.c.bf16 %v963_v60, %v962_v59 }
 0x1ed   : > { %v984_v1 = vpack.c.bf16 %v961_v62, %v960_v61  ;;  %v2155_v2 = vpop.f32.mrb[36].mxu1 }
 0x1ee   : > { %v906_v3 = vadd.f32 %v2155_v2, %v2604_v57  ;;  %v897_v4 = vpop.f32.mrb[37].mxu1 }
 0x1ef   : > { %v898_v5 = vadd.f32 %v2604_v57, %v897_v4  ;;  %v2156_v6 = vpop.f32.mrb[38].mxu1  ;;  %2197 = vmatprep.mubr.bf16.mxu0 %v984_v1 }
 0x1f0   : > { %v909_v7 = vadd.f32 %v2156_v6, %v2604_v57  ;;  %v900_v8 = vpop.f32.mrb[39].mxu1  ;;  %2198 = vmatmul.mubr.bf16.gmra.mrb[32].mxu0 %v985_v0  ;;  %v966_v10 = vmax.f32 %v906_v3, 0.0 }
 0x1f1   : > { %v901_v9 = vadd.f32 %v2604_v57, %v900_v8  ;;  %v964_v12 = vmax.f32 %v898_v5, 0.0 }
 0x1f2   : > { %v967_v11 = vmax.f32 %v909_v7, 0.0 }
 0x1f3   : > { %v965_v13 = vmax.f32 %v901_v9, 0.0 }
 0x1f4   : > { %v987_v14 = vpack.c.bf16 %v967_v11, %v966_v10 }
 0x1f5   : > { %v986_v15 = vpack.c.bf16 %v965_v13, %v964_v12  ;;  %v2159_v16 = vpop.f32.mrb[40].mxu1 }
 0x1f6   : > { %v922_v17 = vadd.f32 %v2159_v16, %v2604_v57  ;;  %v913_v18 = vpop.f32.mrb[41].mxu1 }
 0x1f7   : > { %v914_v19 = vadd.f32 %v2604_v57, %v913_v18  ;;  %v2160_v20 = vpop.f32.mrb[42].mxu1  ;;  %2201 = vmatprep.mubr.bf16.mxu0 %v986_v15 }
 0x1f8   : > { %v925_v21 = vadd.f32 %v2160_v20, %v2604_v57  ;;  %v916_v22 = vpop.f32.mrb[43].mxu1  ;;  %2202 = vmatmul.mubr.bf16.gmra.mrb[36].mxu0 %v987_v14  ;;  %v970_v24 = vmax.f32 %v922_v17, 0.0 }
 0x1f9   : > { %v917_v23 = vadd.f32 %v2604_v57, %v916_v22  ;;  %v968_v26 = vmax.f32 %v914_v19, 0.0 }
 0x1fa   : > { %v971_v25 = vmax.f32 %v925_v21, 0.0 }
 0x1fb   : > { %v969_v27 = vmax.f32 %v917_v23, 0.0 }
 0x1fc   : > { %v989_v28 = vpack.c.bf16 %v971_v25, %v970_v24 }
 0x1fd   : > { %v988_v29 = vpack.c.bf16 %v969_v27, %v968_v26  ;;  %v2163_v30 = vpop.f32.mrb[44].mxu1 }
 0x1fe   : > { %v938_v31 = vadd.f32 %v2163_v30, %v2604_v57  ;;  %v929_v32 = vpop.f32.mrb[45].mxu1 }
 0x1ff   : > { %v930_v33 = vadd.f32 %v2604_v57, %v929_v32  ;;  %v2164_v35 = vpop.f32.mrb[46].mxu1  ;;  %2205 = vmatprep.mubr.bf16.mxu0 %v988_v29 }
 0x200   : > { %v941_v36 = vadd.f32 %v2164_v35, %v2604_v57  ;;  %v932_v38 = vpop.f32.mrb[47].mxu1  ;;  %2206 = vmatmul.mubr.bf16.gmra.mrb[40].mxu0 %v989_v28  ;;  %v974_v40 = vmax.f32 %v938_v31, 0.0 }
 0x201   : > { %v933_v39 = vadd.f32 %v2604_v57, %v932_v38  ;;  %v972_v42 = vmax.f32 %v930_v33, 0.0  ;;  %v2345_v57 = vld [vmem:[%s2859_s9 + $0x8] sm:$0xff]  }
 0x202   : > { %v975_v41 = vmax.f32 %v941_v36, 0.0  ;;  %2263 = vmatprep.subr.bf16.mxu0 %v2345_v57 }
 0x203   : > { %v973_v43 = vmax.f32 %v933_v39, 0.0  ;;  %2264 = vmatpush3.bf16.msra.mxu0 %v2345_v57 }
 0x204   : > { %v991_v44 = vpack.c.bf16 %v975_v41, %v974_v40  ;;  %2265 = vmatprep.subr.bf16.mxu0 %v2346_v48 }
 0x205   : > { %v990_v45 = vpack.c.bf16 %v973_v43, %v972_v42 }
 0x207   : > { %2209 = vmatprep.mubr.bf16.mxu0 %v990_v45  ;;  %2266 = vmatpush3.bf16.msra.mxu0 %v2346_v48 }
 0x208   : > { %2210 = vmatmul.mubr.bf16.gmra.mrb[44].mxu0 %v991_v44  ;;  %2267 = vmatprep.subr.bf16.mxu0 %v2347_v49 }
 0x20b   : > { %2268 = vmatpush3.bf16.msra.mxu0 %v2347_v49 }
 0x20c   : > { %2269 = vmatprep.subr.bf16.mxu0 %v2348_v50 }
 0x20f   : > { %2270 = vmatpush3.bf16.msra.mxu0 %v2348_v50 }
 0x210   : > { %2271 = vmatprep.subr.bf16.mxu0 %v2349_v63 }
 0x213   : > { %2272 = vmatpush3.bf16.msra.mxu0 %v2349_v63 }
 0x214   : > { %2273 = vmatprep.subr.bf16.mxu0 %v2350_v37 }
 0x217   : > { %2274 = vmatpush3.bf16.msra.mxu0 %v2350_v37 }
 0x2a3   : > { %v2183_v51 = vpop.f32.mrb[16].mxu0 }
 0x2a4   : > { %v1106_v52 = vadd.f32 %v2183_v51, %v2665_v34  ;;  %v1097_v53 = vpop.f32.mrb[17].mxu0 }
 0x2a5   : > { %v1098_v54 = vadd.f32 %v2665_v34, %v1097_v53  ;;  %v2184_v55 = vpop.f32.mrb[18].mxu0 }
 0x2a6   : > { %v1109_v56 = vadd.f32 %v2184_v55, %v2665_v34  ;;  %v1100_v58 = vpop.f32.mrb[19].mxu0  ;;  %v1226_v60 = vmax.f32 %v1106_v52, 0.0 }
 0x2a7   : > { %v1101_v59 = vadd.f32 %v2665_v34, %v1100_v58  ;;  %v1224_v62 = vmax.f32 %v1098_v54, 0.0 }
 0x2a8   : > { %v1227_v61 = vmax.f32 %v1109_v56, 0.0 }
 0x2a9   : > { %v1225_v0 = vmax.f32 %v1101_v59, 0.0 }
 0x2aa   : > { %v1257_v1 = vpack.c.bf16 %v1227_v61, %v1226_v60 }
 0x2ab   : > { %v1256_v2 = vpack.c.bf16 %v1225_v0, %v1224_v62  ;;  %v2187_v3 = vpop.f32.mrb[20].mxu0 }
 0x2ac   : > { %v1122_v4 = vadd.f32 %v2187_v3, %v2665_v34  ;;  %v1113_v5 = vpop.f32.mrb[21].mxu0 }
 0x2ad   : > { %v1114_v6 = vadd.f32 %v2665_v34, %v1113_v5  ;;  %v2188_v7 = vpop.f32.mrb[22].mxu0  ;;  %2229 = vmatprep.mubr.bf16.mxu1 %v1256_v2 }
 0x2ae   : > { %v1125_v8 = vadd.f32 %v2188_v7, %v2665_v34  ;;  %v1116_v9 = vpop.f32.mrb[23].mxu0  ;;  %2230 = vmatmul.mubr.bf16.vlgmr.msra.gmra.mrb[48].mxu1 %v1257_v1  ;;  %v1230_v11 = vmax.f32 %v1122_v4, 0.0 }
 0x2af   : > { %v1117_v10 = vadd.f32 %v2665_v34, %v1116_v9  ;;  %v1228_v13 = vmax.f32 %v1114_v6, 0.0 }
 0x2b0   : > { %v1231_v12 = vmax.f32 %v1125_v8, 0.0 }
 0x2b1   : > { %v1229_v14 = vmax.f32 %v1117_v10, 0.0 }
 0x2b2   : > { %v1259_v15 = vpack.c.bf16 %v1231_v12, %v1230_v11 }
 0x2b3   : > { %v1258_v16 = vpack.c.bf16 %v1229_v14, %v1228_v13  ;;  %v2191_v17 = vpop.f32.mrb[24].mxu0 }
 0x2b4   : > { %v1138_v18 = vadd.f32 %v2191_v17, %v2665_v34  ;;  %v1129_v19 = vpop.f32.mrb[25].mxu0 }
 0x2b5   : > { %v1130_v20 = vadd.f32 %v2665_v34, %v1129_v19  ;;  %v2192_v21 = vpop.f32.mrb[26].mxu0  ;;  %2233 = vmatprep.mubr.bf16.mxu1 %v1258_v16 }
 0x2b6   : > { %v1141_v22 = vadd.f32 %v2192_v21, %v2665_v34  ;;  %v1132_v23 = vpop.f32.mrb[27].mxu0  ;;  %2234 = vmatmul.mubr.bf16.gmra.mrb[52].mxu1 %v1259_v15  ;;  %v1234_v25 = vmax.f32 %v1138_v18, 0.0 }
 0x2b7   : > { %v1133_v24 = vadd.f32 %v2665_v34, %v1132_v23  ;;  %v1232_v27 = vmax.f32 %v1130_v20, 0.0 }
 0x2b8   : > { %v1235_v26 = vmax.f32 %v1141_v22, 0.0 }
 0x2b9   : > { %v1233_v28 = vmax.f32 %v1133_v24, 0.0 }
 0x2ba   : > { %v1261_v29 = vpack.c.bf16 %v1235_v26, %v1234_v25 }
 0x2bb   : > { %v1260_v30 = vpack.c.bf16 %v1233_v28, %v1232_v27  ;;  %v2195_v31 = vpop.f32.mrb[28].mxu0 }
 0x2bc   : > { %v1154_v32 = vadd.f32 %v2195_v31, %v2665_v34  ;;  %v1145_v33 = vpop.f32.mrb[29].mxu0 }
 0x2bd   : > { %v1146_v35 = vadd.f32 %v2665_v34, %v1145_v33  ;;  %v2196_v36 = vpop.f32.mrb[30].mxu0  ;;  %2237 = vmatprep.mubr.bf16.mxu1 %v1260_v30 }
 0x2be   : > { %v1157_v38 = vadd.f32 %v2196_v36, %v2665_v34  ;;  %v1148_v39 = vpop.f32.mrb[31].mxu0  ;;  %2238 = vmatmul.mubr.bf16.gmra.mrb[56].mxu1 %v1261_v29  ;;  %v1238_v41 = vmax.f32 %v1154_v32, 0.0 }
 0x2bf   : > { %v1149_v40 = vadd.f32 %v2665_v34, %v1148_v39  ;;  %v1236_v43 = vmax.f32 %v1146_v35, 0.0 }
 0x2c0   : > { %v1239_v42 = vmax.f32 %v1157_v38, 0.0 }
 0x2c1   : > { %v1237_v44 = vmax.f32 %v1149_v40, 0.0  ;;  %v2351_v40 = vld [vmem:[%s2859_s9 + $0x38] sm:$0xff]  }
 0x2c2   : > { %v1263_v45 = vpack.c.bf16 %v1239_v42, %v1238_v41  ;;  %2275 = vmatprep.subr.bf16.mxu0 %v2351_v40  ;;  %v2705_v41 = vld [vmem:[%s2858_s8] ss:$0 sm:$0xff] }
 0x2c3   : > { %v1262_v46 = vpack.c.bf16 %v1237_v44, %v1236_v43  ;;  %v2199_v47 = vpop.f32.mrb[32].mxu0  ;;  %2276 = vmatpush3.bf16.msra.mxu0 %v2351_v40 }
 0x2c4   : > { %v1170_v57 = vadd.f32 %v2199_v47, %v2665_v34  ;;  %v1161_v48 = vpop.f32.mrb[33].mxu0 }
 0x2c5   : > { %v1162_v49 = vadd.f32 %v2665_v34, %v1161_v48  ;;  %v2200_v50 = vpop.f32.mrb[34].mxu0  ;;  %2241 = vmatprep.mubr.bf16.mxu1 %v1262_v46 }
 0x2c6   : > { %v1173_v63 = vadd.f32 %v2200_v50, %v2665_v34  ;;  %v1164_v37 = vpop.f32.mrb[35].mxu0  ;;  %2242 = vmatmul.mubr.bf16.gmra.mrb[60].mxu1 %v1263_v45  ;;  %v1242_v52 = vmax.f32 %v1170_v57, 0.0 }
 0x2c7   : > { %v1165_v51 = vadd.f32 %v2665_v34, %v1164_v37  ;;  %v1240_v54 = vmax.f32 %v1162_v49, 0.0 }
 0x2c8   : > { %v1243_v53 = vmax.f32 %v1173_v63, 0.0 }
 0x2c9   : > { %v1241_v55 = vmax.f32 %v1165_v51, 0.0 }
 0x2ca   : > { %v1265_v56 = vpack.c.bf16 %v1243_v53, %v1242_v52 }
 0x2cb   : > { %v1264_v58 = vpack.c.bf16 %v1241_v55, %v1240_v54  ;;  %v2203_v59 = vpop.f32.mrb[36].mxu0 }
 0x2cc   : > { %v1186_v60 = vadd.f32 %v2203_v59, %v2665_v34  ;;  %v1177_v61 = vpop.f32.mrb[37].mxu0 }
 0x2cd   : > { %v1178_v62 = vadd.f32 %v2665_v34, %v1177_v61  ;;  %v2204_v0 = vpop.f32.mrb[38].mxu0  ;;  %2245 = vmatprep.mubr.bf16.mxu1 %v1264_v58 }
 0x2ce   : > { %v1189_v1 = vadd.f32 %v2204_v0, %v2665_v34  ;;  %v1180_v2 = vpop.f32.mrb[39].mxu0  ;;  %2246 = vmatmul.mubr.bf16.gmra.mrb[64].mxu1 %v1265_v56  ;;  %v1246_v4 = vmax.f32 %v1186_v60, 0.0 }
 0x2cf   : > { %v1181_v3 = vadd.f32 %v2665_v34, %v1180_v2  ;;  %v1244_v6 = vmax.f32 %v1178_v62, 0.0 }
 0x2d0   : > { %v1247_v5 = vmax.f32 %v1189_v1, 0.0 }
 0x2d1   : > { %v1245_v7 = vmax.f32 %v1181_v3, 0.0 }
 0x2d2   : > { %v1267_v8 = vpack.c.bf16 %v1247_v5, %v1246_v4 }
 0x2d3   : > { %v1266_v9 = vpack.c.bf16 %v1245_v7, %v1244_v6  ;;  %v2207_v10 = vpop.f32.mrb[40].mxu0 }
 0x2d4   : > { %v1202_v11 = vadd.f32 %v2207_v10, %v2665_v34  ;;  %v1193_v12 = vpop.f32.mrb[41].mxu0 }
 0x2d5   : > { %v1194_v13 = vadd.f32 %v2665_v34, %v1193_v12  ;;  %v2208_v14 = vpop.f32.mrb[42].mxu0  ;;  %2249 = vmatprep.mubr.bf16.mxu1 %v1266_v9 }
 0x2d6   : > { %v1205_v15 = vadd.f32 %v2208_v14, %v2665_v34  ;;  %v1196_v16 = vpop.f32.mrb[43].mxu0  ;;  %2250 = vmatmul.mubr.bf16.gmra.mrb[68].mxu1 %v1267_v8  ;;  %v1250_v18 = vmax.f32 %v1202_v11, 0.0 }
 0x2d7   : > { %v1197_v17 = vadd.f32 %v2665_v34, %v1196_v16  ;;  %v1248_v20 = vmax.f32 %v1194_v13, 0.0 }
 0x2d8   : > { %v1251_v19 = vmax.f32 %v1205_v15, 0.0 }
 0x2d9   : > { %v1249_v21 = vmax.f32 %v1197_v17, 0.0 }
 0x2da   : > { %v1269_v22 = vpack.c.bf16 %v1251_v19, %v1250_v18 }
 0x2db   : > { %v1268_v23 = vpack.c.bf16 %v1249_v21, %v1248_v20  ;;  %v2211_v24 = vpop.f32.mrb[44].mxu0 }
 0x2dc   : > { %v1218_v25 = vadd.f32 %v2211_v24, %v2665_v34  ;;  %v1209_v26 = vpop.f32.mrb[45].mxu0 }
 0x2dd   : > { %v1210_v27 = vadd.f32 %v2665_v34, %v1209_v26  ;;  %v2212_v28 = vpop.f32.mrb[46].mxu0  ;;  %2253 = vmatprep.mubr.bf16.mxu1 %v1268_v23 }
 0x2de   : > { %v1221_v29 = vadd.f32 %v2212_v28, %v2665_v34  ;;  %v1212_v30 = vpop.f32.mrb[47].mxu0  ;;  %2254 = vmatmul.mubr.bf16.gmra.mrb[72].mxu1 %v1269_v22  ;;  %v1254_v32 = vmax.f32 %v1218_v25, 0.0 }
 0x2df   : > { %v1213_v31 = vadd.f32 %v2665_v34, %v1212_v30  ;;  %v1252_v35 = vmax.f32 %v1210_v27, 0.0 }
 0x2e0   : > { %v1255_v33 = vmax.f32 %v1221_v29, 0.0 }
 0x2e1   : > { %v1253_v36 = vmax.f32 %v1213_v31, 0.0 }
 0x2e2   : > { %v1271_v38 = vpack.c.bf16 %v1255_v33, %v1254_v32 }
 0x2e3   : > { %v1270_v39 = vpack.c.bf16 %v1253_v36, %v1252_v35 }
 0x2e5   : > { %2257 = vmatprep.mubr.bf16.mxu1 %v1270_v39 }
 0x2e6   : > { %2258 = vmatmul.mubr.bf16.gmra.mrb[76].mxu1 %v1271_v38 }
 0x381   : > { %v2231_v34 = vpop.f32.mrb[48].mxu1 }
 0x382   : > { %v1386_v42 = vadd.f32 %v2231_v34, %v2705_v41  ;;  %v1377_v43 = vpop.f32.mrb[49].mxu1 }
 0x383   : > { %v1378_v44 = vadd.f32 %v2705_v41, %v1377_v43  ;;  %v2232_v45 = vpop.f32.mrb[50].mxu1 }
 0x384   : > { %v1389_v46 = vadd.f32 %v2232_v45, %v2705_v41  ;;  %v1380_v47 = vpop.f32.mrb[51].mxu1  ;;  %v1506_v48 = vmax.f32 %v1386_v42, 0.0 }
 0x385   : > { %v1381_v57 = vadd.f32 %v2705_v41, %v1380_v47  ;;  %v1504_v50 = vmax.f32 %v1378_v44, 0.0 }
 0x386   : > { %v1507_v49 = vmax.f32 %v1389_v46, 0.0 }
 0x387   : > { %v1505_v63 = vmax.f32 %v1381_v57, 0.0 }
 0x388   : > { %v1537_v37 = vpack.c.bf16 %v1507_v49, %v1506_v48 }
 0x389   : > { %v1536_v51 = vpack.c.bf16 %v1505_v63, %v1504_v50  ;;  %v2235_v52 = vpop.f32.mrb[52].mxu1 }
 0x38a   : > { %v1402_v53 = vadd.f32 %v2235_v52, %v2705_v41  ;;  %v1393_v54 = vpop.f32.mrb[53].mxu1 }
 0x38b   : > { %v1394_v55 = vadd.f32 %v2705_v41, %v1393_v54  ;;  %v2236_v56 = vpop.f32.mrb[54].mxu1  ;;  %2277 = vmatprep.mubr.bf16.mxu0 %v1536_v51 }
 0x38c   : > { %v1405_v58 = vadd.f32 %v2236_v56, %v2705_v41  ;;  %v1396_v59 = vpop.f32.mrb[55].mxu1  ;;  %2278 = vmatmul.mubr.bf16.vlgmr.msra.gmra.mrb[48].mxu0 %v1537_v37  ;;  %v1510_v61 = vmax.f32 %v1402_v53, 0.0 }
 0x38d   : > { %v1397_v60 = vadd.f32 %v2705_v41, %v1396_v59  ;;  %v1508_v0 = vmax.f32 %v1394_v55, 0.0 }
 0x38e   : > { %v1511_v62 = vmax.f32 %v1405_v58, 0.0 }
 0x38f   : > { %v1509_v1 = vmax.f32 %v1397_v60, 0.0 }
 0x390   : > { %v1539_v2 = vpack.c.bf16 %v1511_v62, %v1510_v61 }
 0x391   : > { %v1538_v3 = vpack.c.bf16 %v1509_v1, %v1508_v0  ;;  %v2239_v4 = vpop.f32.mrb[56].mxu1 }
 0x392   : > { %v1418_v5 = vadd.f32 %v2239_v4, %v2705_v41  ;;  %v1409_v6 = vpop.f32.mrb[57].mxu1 }
 0x393   : > { %v1410_v7 = vadd.f32 %v2705_v41, %v1409_v6  ;;  %v2240_v8 = vpop.f32.mrb[58].mxu1  ;;  %2281 = vmatprep.mubr.bf16.mxu0 %v1538_v3 }
 0x394   : > { %v1421_v9 = vadd.f32 %v2240_v8, %v2705_v41  ;;  %v1412_v10 = vpop.f32.mrb[59].mxu1  ;;  %2282 = vmatmul.mubr.bf16.gmra.mrb[52].mxu0 %v1539_v2  ;;  %v1514_v12 = vmax.f32 %v1418_v5, 0.0 }
 0x395   : > { %v1413_v11 = vadd.f32 %v2705_v41, %v1412_v10  ;;  %v1512_v14 = vmax.f32 %v1410_v7, 0.0 }
 0x396   : > { %v1515_v13 = vmax.f32 %v1421_v9, 0.0 }
 0x397   : > { %v1513_v15 = vmax.f32 %v1413_v11, 0.0 }
 0x398   : > { %v1541_v16 = vpack.c.bf16 %v1515_v13, %v1514_v12 }
 0x399   : > { %v1540_v17 = vpack.c.bf16 %v1513_v15, %v1512_v14  ;;  %v2243_v18 = vpop.f32.mrb[60].mxu1 }
 0x39a   : > { %v1434_v19 = vadd.f32 %v2243_v18, %v2705_v41  ;;  %v1425_v20 = vpop.f32.mrb[61].mxu1 }
 0x39b   : > { %v1426_v21 = vadd.f32 %v2705_v41, %v1425_v20  ;;  %v2244_v22 = vpop.f32.mrb[62].mxu1  ;;  %2285 = vmatprep.mubr.bf16.mxu0 %v1540_v17 }
 0x39c   : > { %v1437_v23 = vadd.f32 %v2244_v22, %v2705_v41  ;;  %v1428_v24 = vpop.f32.mrb[63].mxu1  ;;  %2286 = vmatmul.mubr.bf16.gmra.mrb[56].mxu0 %v1541_v16  ;;  %v1518_v26 = vmax.f32 %v1434_v19, 0.0 }
 0x39d   : > { %v1429_v25 = vadd.f32 %v2705_v41, %v1428_v24  ;;  %v1516_v28 = vmax.f32 %v1426_v21, 0.0 }
 0x39e   : > { %v1519_v27 = vmax.f32 %v1437_v23, 0.0 }
 0x39f   : > { %v1517_v29 = vmax.f32 %v1429_v25, 0.0  ;;  %v2742_v25 = vld [vmem:[%s2860_s10] ss:$0 sm:$0xff] }
 0x3a0   : > { %v1543_v30 = vpack.c.bf16 %v1519_v27, %v1518_v26 }
 0x3a1   : > { %v1542_v31 = vpack.c.bf16 %v1517_v29, %v1516_v28  ;;  %v2247_v32 = vpop.f32.mrb[64].mxu1 }
 0x3a2   : > { %v1450_v33 = vadd.f32 %v2247_v32, %v2705_v41  ;;  %v1441_v35 = vpop.f32.mrb[65].mxu1 }
 0x3a3   : > { %v1442_v36 = vadd.f32 %v2705_v41, %v1441_v35  ;;  %v2248_v38 = vpop.f32.mrb[66].mxu1  ;;  %2289 = vmatprep.mubr.bf16.mxu0 %v1542_v31 }
 0x3a4   : > { %v1453_v39 = vadd.f32 %v2248_v38, %v2705_v41  ;;  %v1444_v40 = vpop.f32.mrb[67].mxu1  ;;  %2290 = vmatmul.mubr.bf16.gmra.mrb[60].mxu0 %v1543_v30  ;;  %v1522_v42 = vmax.f32 %v1450_v33, 0.0 }
 0x3a5   : > { %v1445_v34 = vadd.f32 %v2705_v41, %v1444_v40  ;;  %v1520_v44 = vmax.f32 %v1442_v36, 0.0 }
 0x3a6   : > { %v1523_v43 = vmax.f32 %v1453_v39, 0.0 }
 0x3a7   : > { %v1521_v45 = vmax.f32 %v1445_v34, 0.0 }
 0x3a8   : > { %v1545_v46 = vpack.c.bf16 %v1523_v43, %v1522_v42 }
 0x3a9   : > { %v1544_v47 = vpack.c.bf16 %v1521_v45, %v1520_v44  ;;  %v2251_v57 = vpop.f32.mrb[68].mxu1 }
 0x3aa   : > { %v1466_v48 = vadd.f32 %v2251_v57, %v2705_v41  ;;  %v1457_v49 = vpop.f32.mrb[69].mxu1 }
 0x3ab   : > { %v1458_v50 = vadd.f32 %v2705_v41, %v1457_v49  ;;  %v2252_v63 = vpop.f32.mrb[70].mxu1  ;;  %2293 = vmatprep.mubr.bf16.mxu0 %v1544_v47 }
 0x3ac   : > { %v1469_v37 = vadd.f32 %v2252_v63, %v2705_v41  ;;  %v1460_v51 = vpop.f32.mrb[71].mxu1  ;;  %2294 = vmatmul.mubr.bf16.gmra.mrb[64].mxu0 %v1545_v46  ;;  %v1526_v53 = vmax.f32 %v1466_v48, 0.0 }
 0x3ad   : > { %v1461_v52 = vadd.f32 %v2705_v41, %v1460_v51  ;;  %v1524_v55 = vmax.f32 %v1458_v50, 0.0 }
 0x3ae   : > { %v1527_v54 = vmax.f32 %v1469_v37, 0.0 }
 0x3af   : > { %v1525_v56 = vmax.f32 %v1461_v52, 0.0 }
 0x3b0   : > { %v1547_v58 = vpack.c.bf16 %v1527_v54, %v1526_v53 }
 0x3b1   : > { %v1546_v59 = vpack.c.bf16 %v1525_v56, %v1524_v55  ;;  %v2255_v60 = vpop.f32.mrb[72].mxu1 }
 0x3b2   : > { %v1482_v61 = vadd.f32 %v2255_v60, %v2705_v41  ;;  %v1473_v62 = vpop.f32.mrb[73].mxu1 }
 0x3b3   : > { %v1474_v0 = vadd.f32 %v2705_v41, %v1473_v62  ;;  %v2256_v1 = vpop.f32.mrb[74].mxu1  ;;  %2297 = vmatprep.mubr.bf16.mxu0 %v1546_v59 }
 0x3b4   : > { %v1485_v2 = vadd.f32 %v2256_v1, %v2705_v41  ;;  %v1476_v3 = vpop.f32.mrb[75].mxu1  ;;  %2298 = vmatmul.mubr.bf16.gmra.mrb[68].mxu0 %v1547_v58  ;;  %v1530_v5 = vmax.f32 %v1482_v61, 0.0 }
 0x3b5   : > { %v1477_v4 = vadd.f32 %v2705_v41, %v1476_v3  ;;  %v1528_v7 = vmax.f32 %v1474_v0, 0.0 }
 0x3b6   : > { %v1531_v6 = vmax.f32 %v1485_v2, 0.0 }
 0x3b7   : > { %v1529_v8 = vmax.f32 %v1477_v4, 0.0 }
 0x3b8   : > { %v1549_v9 = vpack.c.bf16 %v1531_v6, %v1530_v5 }
 0x3b9   : > { %v1548_v10 = vpack.c.bf16 %v1529_v8, %v1528_v7  ;;  %v2259_v11 = vpop.f32.mrb[76].mxu1 }
 0x3ba   : > { %v1498_v12 = vadd.f32 %v2259_v11, %v2705_v41  ;;  %v1489_v13 = vpop.f32.mrb[77].mxu1 }
 0x3bb   : > { %v1490_v14 = vadd.f32 %v2705_v41, %v1489_v13  ;;  %v2260_v15 = vpop.f32.mrb[78].mxu1  ;;  %2301 = vmatprep.mubr.bf16.mxu0 %v1548_v10 }
 0x3bc   : > { %v1501_v16 = vadd.f32 %v2260_v15, %v2705_v41  ;;  %v1492_v17 = vpop.f32.mrb[79].mxu1  ;;  %2302 = vmatmul.mubr.bf16.gmra.mrb[72].mxu0 %v1549_v9  ;;  %v1534_v19 = vmax.f32 %v1498_v12, 0.0 }
 0x3bd   : > { %v1493_v18 = vadd.f32 %v2705_v41, %v1492_v17  ;;  %v1532_v21 = vmax.f32 %v1490_v14, 0.0 }
 0x3be   : > { %v1535_v20 = vmax.f32 %v1501_v16, 0.0 }
 0x3bf   : > { %v1533_v22 = vmax.f32 %v1493_v18, 0.0 }
 0x3c0   : > { %v1551_v23 = vpack.c.bf16 %v1535_v20, %v1534_v19 }
 0x3c1   : > { %v1550_v24 = vpack.c.bf16 %v1533_v22, %v1532_v21 }
 0x3c3   : > { %2305 = vmatprep.mubr.bf16.mxu0 %v1550_v24 }
 0x3c4   : > { %2306 = vmatmul.mubr.bf16.gmra.mrb[76].mxu0 %v1551_v23 }
 0x45f   : > { %v2279_v26 = vpop.f32.mrb[48].mxu0 }
 0x460   : > { %v1666_v27 = vadd.f32 %v2279_v26, %v2742_v25  ;;  %v1657_v28 = vpop.f32.mrb[49].mxu0 }
 0x461   : > { %v1658_v41 = vadd.f32 %v2742_v25, %v1657_v28  ;;  %v2280_v29 = vpop.f32.mrb[50].mxu0 }
 0x462   : > { %v1786_v30 = vmax.f32 %v1666_v27, 0.0  ;;  %v1669_v31 = vadd.f32 %v2280_v29, %v2742_v25  ;;  %v1660_v32 = vpop.f32.mrb[51].mxu0 }
 0x463   : > { %v1784_v33 = vmax.f32 %v1658_v41, 0.0  ;;  %v1661_v35 = vadd.f32 %v2742_v25, %v1660_v32 }
 0x464   : > { %1819 = vst.msk [vmem:[%s2750_s20 + $0x10] sm:$0xff] %vm1816_vm1, %v1786_v30  ;;  %v1787_v36 = vmax.f32 %v1669_v31, 0.0 }
 0x465   : > { %1817 = vst.msk [vmem:[%s2750_s20] sm:$0xff] %vm1816_vm1, %v1784_v33  ;;  %v1785_v38 = vmax.f32 %v1661_v35, 0.0 }
 0x466   : > { %1820 = vst.msk [vmem:[%s2750_s20 + $0x18] sm:$0xff] %vm1816_vm1, %v1787_v36 }
 0x467   : > { %1818 = vst.msk [vmem:[%s2750_s20 + $0x8] sm:$0xff] %vm1816_vm1, %v1785_v38  ;;  %v2283_v39 = vpop.f32.mrb[52].mxu0 }
 0x468   : > { %v1682_v40 = vadd.f32 %v2283_v39, %v2742_v25  ;;  %v1673_v34 = vpop.f32.mrb[53].mxu0 }
 0x469   : > { %v1674_v42 = vadd.f32 %v2742_v25, %v1673_v34  ;;  %v2284_v43 = vpop.f32.mrb[54].mxu0 }
 0x46a   : > { %v1790_v44 = vmax.f32 %v1682_v40, 0.0  ;;  %v1685_v45 = vadd.f32 %v2284_v43, %v2742_v25  ;;  %v1676_v46 = vpop.f32.mrb[55].mxu0 }
 0x46b   : > { %v1788_v47 = vmax.f32 %v1674_v42, 0.0  ;;  %v1677_v57 = vadd.f32 %v2742_v25, %v1676_v46 }
 0x46c   : > { %1823 = vst.msk [vmem:[%s2750_s20 + $0x30] sm:$0xff] %vm1816_vm1, %v1790_v44  ;;  %v1791_v48 = vmax.f32 %v1685_v45, 0.0 }
 0x46d   : > { %1821 = vst.msk [vmem:[%s2750_s20 + $0x20] sm:$0xff] %vm1816_vm1, %v1788_v47  ;;  %v1789_v49 = vmax.f32 %v1677_v57, 0.0 }
 0x46e   : > { %1824 = vst.msk [vmem:[%s2750_s20 + $0x38] sm:$0xff] %vm1816_vm1, %v1791_v48 }
 0x46f   : > { %1822 = vst.msk [vmem:[%s2750_s20 + $0x28] sm:$0xff] %vm1816_vm1, %v1789_v49  ;;  %v2287_v50 = vpop.f32.mrb[56].mxu0 }
 0x470   : > { %v1698_v63 = vadd.f32 %v2287_v50, %v2742_v25  ;;  %v1689_v37 = vpop.f32.mrb[57].mxu0 }
 0x471   : > { %v1690_v51 = vadd.f32 %v2742_v25, %v1689_v37  ;;  %v2288_v52 = vpop.f32.mrb[58].mxu0 }
 0x472   : > { %v1794_v53 = vmax.f32 %v1698_v63, 0.0  ;;  %v1701_v54 = vadd.f32 %v2288_v52, %v2742_v25  ;;  %v1692_v55 = vpop.f32.mrb[59].mxu0 }
 0x473   : > { %v1792_v56 = vmax.f32 %v1690_v51, 0.0  ;;  %v1693_v58 = vadd.f32 %v2742_v25, %v1692_v55 }
 0x474   : > { %1827 = vst.msk [vmem:[%s2750_s20 + $0x50] sm:$0xff] %vm1816_vm1, %v1794_v53  ;;  %v1795_v59 = vmax.f32 %v1701_v54, 0.0 }
 0x475   : > { %1825 = vst.msk [vmem:[%s2750_s20 + $0x40] sm:$0xff] %vm1816_vm1, %v1792_v56  ;;  %v1793_v60 = vmax.f32 %v1693_v58, 0.0 }
 0x476   : > { %1828 = vst.msk [vmem:[%s2750_s20 + $0x58] sm:$0xff] %vm1816_vm1, %v1795_v59 }
 0x477   : > { %1826 = vst.msk [vmem:[%s2750_s20 + $0x48] sm:$0xff] %vm1816_vm1, %v1793_v60  ;;  %v2291_v61 = vpop.f32.mrb[60].mxu0 }
 0x478   : > { %v1714_v62 = vadd.f32 %v2291_v61, %v2742_v25  ;;  %v1705_v0 = vpop.f32.mrb[61].mxu0 }
 0x479   : > { %v1706_v1 = vadd.f32 %v2742_v25, %v1705_v0  ;;  %v2292_v2 = vpop.f32.mrb[62].mxu0 }
 0x47a   : > { %v1798_v3 = vmax.f32 %v1714_v62, 0.0  ;;  %v1717_v4 = vadd.f32 %v2292_v2, %v2742_v25  ;;  %v1708_v5 = vpop.f32.mrb[63].mxu0 }
 0x47b   : > { %v1796_v6 = vmax.f32 %v1706_v1, 0.0  ;;  %v1709_v7 = vadd.f32 %v2742_v25, %v1708_v5 }
 0x47c   : > { %1831 = vst.msk [vmem:[%s2750_s20 + $0x70] sm:$0xff] %vm1816_vm1, %v1798_v3  ;;  %v1799_v8 = vmax.f32 %v1717_v4, 0.0 }
 0x47d   : > { %1829 = vst.msk [vmem:[%s2750_s20 + $0x60] sm:$0xff] %vm1816_vm1, %v1796_v6  ;;  %v1797_v9 = vmax.f32 %v1709_v7, 0.0 }
 0x47e   : > { %1832 = vst.msk [vmem:[%s2750_s20 + $0x78] sm:$0xff] %vm1816_vm1, %v1799_v8 }
 0x47f   : > { %1830 = vst.msk [vmem:[%s2750_s20 + $0x68] sm:$0xff] %vm1816_vm1, %v1797_v9  ;;  %v2295_v10 = vpop.f32.mrb[64].mxu0 }
 0x480   : > { %v1730_v11 = vadd.f32 %v2295_v10, %v2742_v25  ;;  %v1721_v12 = vpop.f32.mrb[65].mxu0 }
 0x481   : > { %v1722_v13 = vadd.f32 %v2742_v25, %v1721_v12  ;;  %v2296_v14 = vpop.f32.mrb[66].mxu0 }
 0x482   : > { %v1802_v15 = vmax.f32 %v1730_v11, 0.0  ;;  %v1733_v16 = vadd.f32 %v2296_v14, %v2742_v25  ;;  %v1724_v17 = vpop.f32.mrb[67].mxu0 }
 0x483   : > { %v1800_v18 = vmax.f32 %v1722_v13, 0.0  ;;  %v1725_v19 = vadd.f32 %v2742_v25, %v1724_v17 }
 0x484   : > { %1835 = vst.msk [vmem:[%s2750_s20 + $0x90] sm:$0xff] %vm1816_vm1, %v1802_v15  ;;  %v1803_v20 = vmax.f32 %v1733_v16, 0.0 }
 0x485   : > { %1833 = vst.msk [vmem:[%s2750_s20 + $0x80] sm:$0xff] %vm1816_vm1, %v1800_v18  ;;  %v1801_v21 = vmax.f32 %v1725_v19, 0.0 }
 0x486   : > { %1836 = vst.msk [vmem:[%s2750_s20 + $0x98] sm:$0xff] %vm1816_vm1, %v1803_v20 }
 0x487   : > { %1834 = vst.msk [vmem:[%s2750_s20 + $0x88] sm:$0xff] %vm1816_vm1, %v1801_v21  ;;  %v2299_v22 = vpop.f32.mrb[68].mxu0 }
 0x488   : > { %v1746_v23 = vadd.f32 %v2299_v22, %v2742_v25  ;;  %v1737_v24 = vpop.f32.mrb[69].mxu0 }
 0x489   : > { %v1738_v26 = vadd.f32 %v2742_v25, %v1737_v24  ;;  %v2300_v27 = vpop.f32.mrb[70].mxu0 }
 0x48a   : > { %v1806_v28 = vmax.f32 %v1746_v23, 0.0  ;;  %v1749_v41 = vadd.f32 %v2300_v27, %v2742_v25  ;;  %v1740_v29 = vpop.f32.mrb[71].mxu0 }
 0x48b   : > { %v1804_v30 = vmax.f32 %v1738_v26, 0.0  ;;  %v1741_v31 = vadd.f32 %v2742_v25, %v1740_v29 }
 0x48c   : > { %1839 = vst.msk [vmem:[%s2750_s20 + $0xb0] sm:$0xff] %vm1816_vm1, %v1806_v28  ;;  %v1807_v32 = vmax.f32 %v1749_v41, 0.0 }
 0x48d   : > { %1837 = vst.msk [vmem:[%s2750_s20 + $0xa0] sm:$0xff] %vm1816_vm1, %v1804_v30  ;;  %v1805_v33 = vmax.f32 %v1741_v31, 0.0 }
 0x48e   : > { %1840 = vst.msk [vmem:[%s2750_s20 + $0xb8] sm:$0xff] %vm1816_vm1, %v1807_v32 }
 0x48f   : > { %1838 = vst.msk [vmem:[%s2750_s20 + $0xa8] sm:$0xff] %vm1816_vm1, %v1805_v33  ;;  %v2303_v35 = vpop.f32.mrb[72].mxu0 }
 0x490   : > { %v1762_v36 = vadd.f32 %v2303_v35, %v2742_v25  ;;  %v1753_v38 = vpop.f32.mrb[73].mxu0 }
 0x491   : > { %v1754_v39 = vadd.f32 %v2742_v25, %v1753_v38  ;;  %v2304_v40 = vpop.f32.mrb[74].mxu0 }
 0x492   : > { %v1810_v34 = vmax.f32 %v1762_v36, 0.0  ;;  %v1765_v42 = vadd.f32 %v2304_v40, %v2742_v25  ;;  %v1756_v43 = vpop.f32.mrb[75].mxu0 }
 0x493   : > { %v1808_v44 = vmax.f32 %v1754_v39, 0.0  ;;  %v1757_v45 = vadd.f32 %v2742_v25, %v1756_v43 }
 0x494   : > { %1843 = vst.msk [vmem:[%s2750_s20 + $0xd0] sm:$0xff] %vm1816_vm1, %v1810_v34  ;;  %v1811_v46 = vmax.f32 %v1765_v42, 0.0 }
 0x495   : > { %1841 = vst.msk [vmem:[%s2750_s20 + $0xc0] sm:$0xff] %vm1816_vm1, %v1808_v44  ;;  %v1809_v47 = vmax.f32 %v1757_v45, 0.0 }
 0x496   : > { %1844 = vst.msk [vmem:[%s2750_s20 + $0xd8] sm:$0xff] %vm1816_vm1, %v1811_v46 }
 0x497   : > { %1842 = vst.msk [vmem:[%s2750_s20 + $0xc8] sm:$0xff] %vm1816_vm1, %v1809_v47  ;;  %v2307_v57 = vpop.f32.mrb[76].mxu0 }
 0x498   : > { %v1778_v48 = vadd.f32 %v2307_v57, %v2742_v25  ;;  %v1769_v49 = vpop.f32.mrb[77].mxu0 }
 0x499   : > { %v1770_v50 = vadd.f32 %v2742_v25, %v1769_v49  ;;  %v2308_v63 = vpop.f32.mrb[78].mxu0 }
 0x49a   : > { %v1814_v37 = vmax.f32 %v1778_v48, 0.0  ;;  %v1781_v51 = vadd.f32 %v2308_v63, %v2742_v25  ;;  %v1772_v52 = vpop.f32.mrb[79].mxu0 }
 0x49b   : > { %v1812_v53 = vmax.f32 %v1770_v50, 0.0  ;;  %v1773_v54 = vadd.f32 %v2742_v25, %v1772_v52 }
 0x49c   : > { %1847 = vst.msk [vmem:[%s2750_s20 + $0xf0] sm:$0xff] %vm1816_vm1, %v1814_v37  ;;  %v1815_v55 = vmax.f32 %v1781_v51, 0.0 }
 0x49d   : > { %1845 = vst.msk [vmem:[%s2750_s20 + $0xe0] sm:$0xff] %vm1816_vm1, %v1812_v53  ;;  %v1813_v56 = vmax.f32 %v1773_v54, 0.0 }
 0x49e   : > { %1848 = vst.msk [vmem:[%s2750_s20 + $0xf8] sm:$0xff] %vm1816_vm1, %v1815_v55 }
 0x49f   : > { %1846 = vst.msk [vmem:[%s2750_s20 + $0xe8] sm:$0xff] %vm1816_vm1, %v1813_v56 }
 0x4a0 PF: > { %s21_s17 = sadd.s32 1, %s2358_s17  }
 0x4a1   : > { %p18_p4 = scmp.ge.s32.totalorder %s21_s17, 4  }
 0x4a3   :  { %20 = sbr.rel (!%p18_p4) target bundleno = 1 (0x1), region = 94 }

// kernel: tpu_custom_call.1
= control target key start
LH: loop header
LB: loop body
LE: loop exit
PB: predicated region body
PF: predicated region fallthrough
CT: control target
= control target key end

     0   :  { %s2420_s17 = smov 0   ;;  %s2850_s0 = inlined_call_operand.vmem [shape: f32[512,16], index: 0, kind: input, shape index: {}]   ;;  %s2851_s1 = inlined_call_operand.vmem [shape: bf16[16,128], index: 1, kind: input, shape index: {}]   ;;  %s2852_s2 = inlined_call_operand.vmem [shape: f32[1,128], index: 2, kind: input, shape index: {}]   ;;  %s2853_s3 = inlined_call_operand.vmem [shape: bf16[128,128], index: 3, kind: input, shape index: {}]   ;;  %s2854_s4 = inlined_call_operand.vmem [shape: f32[1,128], index: 4, kind: input, shape index: {}]   ;;  %s2855_s5 = inlined_call_operand.vmem [shape: bf16[128,128], index: 5, kind: input, shape index: {}]   ;;  %s2856_s6 = inlined_call_operand.vmem [shape: f32[1,128], index: 6, kind: input, shape index: {}]   ;;  %s2857_s7 = inlined_call_operand.vmem [shape: bf16[128,128], index: 7, kind: input, shape index: {}]   ;;  %s2858_s8 = inlined_call_operand.vmem [shape: f32[1,128], index: 8, kind: input, shape index: {}]   ;;  %s2859_s9 = inlined_call_operand.vmem [shape: bf16[128,8], index: 9, kind: input, shape index: {}]   ;;  %s2860_s10 = inlined_call_operand.vmem [shape: f32[1,8], index: 10, kind: input, shape index: {}]   ;;  %s2861_s11 = inlined_call_operand.vmem [shape: f32[512,8], index: 11, kind: output, shape index: {}]  }
   0x1 LB: > { %s1905_s18 = sadd.s32 4294967295, %s2358_s17   ;;  %p1909_p0 = scmp.ge.s32.totalorder %s2358_s17, 1  ;;  %s2358_s17 = sphi %s2420_s17, %s21_s17  }
   0x2   : > { %p338_p1 = scmp.lt.s32.totalorder %s2358_s17, 3 }
   0x4   : > { %p339_p2 = pnand %p1909_p0, %p338_p1 }
   0x5   : > { %v2319_v0 = vld [vmem:[%s2851_s1] sm:$0xff] (!%p339_p2)   ;;  %s1910_s21 = sshll.u32 (!%p339_p2), %s1905_s18, 5  ;;  %vm454_vm0 = vcmask (!%p339_p2), 130048   ;;  %v2321_v23 = vld [vmem:[%s2853_s3 + $0x8] sm:$0xff] (!%p339_p2)   ;;  %v2322_v28 = vld [vmem:[%s2853_s3 + $0x10] sm:$0xff] (!%p339_p2)   ;;  %vm1816_vm1 = vcmask (!%p339_p2), 64512  }
   0x6   : > { %342 = sbr.rel (%p339_p2) target bundleno = 1184 (0x4a0), region = 64  ;;  %p379_p3 = scmp.lt.s32.totalorder (!%p339_p2), %s1910_s21, 63  ;;  %2083 = vmatprep.subr.bf16.mxu0 (!%p339_p2), %v2319_v0  ;;  %2309 = vmatprep.subr.bf16.mxu1 (!%p339_p2), %v2319_v0  ;;  %v2320_v1 = vld [vmem:[%s2853_s3] sm:$0xff] (!%p339_p2)   ;;  %v2323_v37 = vld [vmem:[%s2853_s3 + $0x18] sm:$0xff] (!%p339_p2)   ;;  %v2325_v49 = vld [vmem:[%s2853_s3 + $0x28] sm:$0xff] (!%p339_p2)  }
   0x7   : > { %2084 = vmatpush3.bf16.msra.mxu0 (!%p339_p2), %v2319_v0  ;;  %2310 = vmatpush3.bf16.msra.mxu1 (!%p339_p2), %v2319_v0  ;;  %v2324_v45 = vld [vmem:[%s2853_s3 + $0x20] sm:$0xff] (!%p339_p2)   ;;  %v2326_v55 = vld [vmem:[%s2853_s3 + $0x30] sm:$0xff] (!%p339_p2)   ;;  %v2327_v56 = vld [vmem:[%s2853_s3 + $0x38] sm:$0xff] (!%p339_p2)  }
   0x8   : > { %2117 = vmatprep.subr.bf16.mxu1 (!%p339_p2), %v2320_v1  ;;  %v2328_v57 = vld [vmem:[%s2855_s5] sm:$0xff] (!%p339_p2)   ;;  %v2329_v58 = vld [vmem:[%s2855_s5 + $0x8] sm:$0xff] (!%p339_p2)   ;;  %v2330_v59 = vld [vmem:[%s2855_s5 + $0x10] sm:$0xff] (!%p339_p2)  }
   0x9   : > { %2165 = vmatprep.subr.bf16.mxu0 (!%p339_p2), %v2328_v57  ;;  %v2331_v60 = vld [vmem:[%s2855_s5 + $0x18] sm:$0xff] (!%p339_p2)   ;;  %v2332_v61 = vld [vmem:[%s2855_s5 + $0x20] sm:$0xff] (!%p339_p2)   ;;  %v2333_v62 = vld [vmem:[%s2855_s5 + $0x28] sm:$0xff] (!%p339_p2)  }
   0xa   : > { %v2534_v63 = vld [vmem:[%s2852_s2] ss:$0 sm:$0xff] (!%p339_p2) }
   0xd   : > { %s2863_s21 = smov (!%p379_p3, %s1910_s21), 63 }
   0xe   : > { %s1911_s24 = sshll.u32 %s2863_s21, 3 }
   0xf   : > { %s2442_s27 = scalar_lea.vmem %s2850_s0, %s1911_s24  ;;  %s2750_s20 = scalar_lea.vmem %s2861_s11, %s1911_s24 }
  0x10   : > { %v391_v2 = vld [vmem:[%s2442_s27] sm:$0xff]  ;;  %v392_v3 = vld [vmem:[%s2442_s27 + $0x8] sm:$0xff]  ;;  %v393_v4 = vld [vmem:[%s2442_s27 + $0x10] sm:$0xff] }
  0x11   : > { %v423_v5 = vpack.c.bf16 %v392_v3, %v391_v2  ;;  %v394_v6 = vld [vmem:[%s2442_s27 + $0x18] sm:$0xff]  ;;  %v395_v7 = vld [vmem:[%s2442_s27 + $0x20] sm:$0xff]  ;;  %v396_v8 = vld [vmem:[%s2442_s27 + $0x28] sm:$0xff] }
  0x12   : > { %v424_v9 = vpack.c.bf16 %v394_v6, %v393_v4  ;;  %v425_v10 = vpack.c.bf16 %v396_v8, %v395_v7  ;;  %v397_v11 = vld [vmem:[%s2442_s27 + $0x30] sm:$0xff]  ;;  %v398_v12 = vld [vmem:[%s2442_s27 + $0x38] sm:$0xff]  ;;  %v399_v13 = vld [vmem:[%s2442_s27 + $0x40] sm:$0xff] }
  0x13   : > { %2085 = vmatprep.mubr.msk.bf16.mxu0 %vm454_vm0, %v423_v5  ;;  %v400_v14 = vld [vmem:[%s2442_s27 + $0x48] sm:$0xff]  ;;  %v407_v15 = vld [vmem:[%s2442_s27 + $0x80] sm:$0xff]  ;;  %v409_v18 = vld [vmem:[%s2442_s27 + $0x90] sm:$0xff]  ;;  %v426_v24 = vpack.c.bf16 %v398_v12, %v397_v11 }
  0x14   : > { %2086 = vmatmul.mubr.msk.bf16.vlgmr.msra.gmra.mrb[0].mxu0 %vm454_vm0, %v424_v9  ;;  %v408_v16 = vld [vmem:[%s2442_s27 + $0x88] sm:$0xff]  ;;  %v410_v19 = vld [vmem:[%s2442_s27 + $0x98] sm:$0xff]  ;;  %v411_v20 = vld [vmem:[%s2442_s27 + $0xa0] sm:$0xff]  ;;  %v427_v26 = vpack.c.bf16 %v400_v14, %v399_v13 }
  0x15   : > { %2089 = vmatprep.mubr.msk.bf16.mxu0 %vm454_vm0, %v425_v10  ;;  %v431_v17 = vpack.c.bf16 %v408_v16, %v407_v15  ;;  %v432_v21 = vpack.c.bf16 %v410_v19, %v409_v18  ;;  %v412_v22 = vld [vmem:[%s2442_s27 + $0xa8] sm:$0xff]  ;;  %v413_v27 = vld [vmem:[%s2442_s27 + $0xb0] sm:$0xff]  ;;  %v414_v29 = vld [vmem:[%s2442_s27 + $0xb8] sm:$0xff]  ;;  %2166 = vmatpush3.bf16.msra.mxu0 %v2328_v57 }
  0x16   : > { %v433_v25 = vpack.c.bf16 %v412_v22, %v411_v20  ;;  %v415_v30 = vld [vmem:[%s2442_s27 + $0xc0] sm:$0xff]  ;;  %v416_v31 = vld [vmem:[%s2442_s27 + $0xc8] sm:$0xff]  ;;  %v401_v32 = vld [vmem:[%s2442_s27 + $0x50] sm:$0xff]  ;;  %v434_v36 = vpack.c.bf16 %v414_v29, %v413_v27  ;;  %2167 = vmatprep.subr.bf16.mxu0 %v2329_v58 }
  0x17   : > { %2101 = vmatprep.mubr.msk.bf16.mxu1 %vm454_vm0, %v431_v17  ;;  %v402_v33 = vld [vmem:[%s2442_s27 + $0x58] sm:$0xff]  ;;  %v403_v34 = vld [vmem:[%s2442_s27 + $0x60] sm:$0xff]  ;;  %v404_v35 = vld [vmem:[%s2442_s27 + $0x68] sm:$0xff]  ;;  %v435_v38 = vpack.c.bf16 %v416_v31, %v415_v30 }
  0x18   : > { %2102 = vmatmul.mubr.msk.bf16.vlgmr.msra.gmra.mrb[0].mxu1 %vm454_vm0, %v432_v21  ;;  %v428_v39 = vpack.c.bf16 %v402_v33, %v401_v32  ;;  %v417_v40 = vld [vmem:[%s2442_s27 + $0xd0] sm:$0xff]  ;;  %v418_v41 = vld [vmem:[%s2442_s27 + $0xd8] sm:$0xff]  ;;  %v429_v42 = vpack.c.bf16 %v404_v35, %v403_v34  ;;  %v419_v43 = vld [vmem:[%s2442_s27 + $0xe0] sm:$0xff] }
  0x19   : > { %2105 = vmatprep.mubr.msk.bf16.mxu1 %vm454_vm0, %v433_v25  ;;  %2118 = vmatpush3.bf16.msra.mxu1 %v2320_v1  ;;  %v420_v44 = vld [vmem:[%s2442_s27 + $0xe8] sm:$0xff]  ;;  %v405_v46 = vld [vmem:[%s2442_s27 + $0x70] sm:$0xff]  ;;  %v406_v47 = vld [vmem:[%s2442_s27 + $0x78] sm:$0xff]  ;;  %v436_v48 = vpack.c.bf16 %v418_v41, %v417_v40 }
  0x1a   : > { %2119 = vmatprep.subr.bf16.mxu1 %v2321_v23  ;;  %v437_v50 = vpack.c.bf16 %v420_v44, %v419_v43  ;;  %v430_v51 = vpack.c.bf16 %v406_v47, %v405_v46  ;;  %v421_v52 = vld [vmem:[%s2442_s27 + $0xf0] sm:$0xff]  ;;  %v422_v53 = vld [vmem:[%s2442_s27 + $0xf8] sm:$0xff]  ;;  %2168 = vmatpush3.bf16.msra.mxu0 %v2329_v58 }
  0x1b   : > { %v438_v54 = vpack.c.bf16 %v422_v53, %v421_v52  ;;  %2169 = vmatprep.subr.bf16.mxu0 %v2330_v59 }
  0x1c   : > { %2090 = vmatmul.mubr.msk.bf16.gmra.mrb[4].mxu0 %vm454_vm0, %v426_v24 }
  0x1d   : > { %2093 = vmatprep.mubr.msk.bf16.mxu0 %vm454_vm0, %v427_v26  ;;  %2120 = vmatpush3.bf16.msra.mxu1 %v2321_v23 }
  0x1e   : > { %2121 = vmatprep.subr.bf16.mxu1 %v2322_v28  ;;  %2170 = vmatpush3.bf16.msra.mxu0 %v2330_v59 }
  0x1f   : > { %2171 = vmatprep.subr.bf16.mxu0 %v2331_v60 }
  0x20   : > { %2106 = vmatmul.mubr.msk.bf16.gmra.mrb[4].mxu1 %vm454_vm0, %v434_v36 }
  0x21   : > { %2109 = vmatprep.mubr.msk.bf16.mxu1 %vm454_vm0, %v435_v38  ;;  %2122 = vmatpush3.bf16.msra.mxu1 %v2322_v28 }
  0x22   : > { %2123 = vmatprep.subr.bf16.mxu1 %v2323_v37  ;;  %2172 = vmatpush3.bf16.msra.mxu0 %v2331_v60 }
  0x23   : > { %2173 = vmatprep.subr.bf16.mxu0 %v2332_v61 }
  0x24   : > { %2094 = vmatmul.mubr.msk.bf16.gmra.mrb[8].mxu0 %vm454_vm0, %v428_v39 }
  0x25   : > { %2097 = vmatprep.mubr.msk.bf16.mxu0 %vm454_vm0, %v429_v42  ;;  %2124 = vmatpush3.bf16.msra.mxu1 %v2323_v37 }
  0x26   : > { %2125 = vmatprep.subr.bf16.mxu1 %v2324_v45  ;;  %2174 = vmatpush3.bf16.msra.mxu0 %v2332_v61 }
  0x27   : > { %2175 = vmatprep.subr.bf16.mxu0 %v2333_v62 }
  0x28   : > { %2110 = vmatmul.mubr.msk.bf16.gmra.mrb[8].mxu1 %vm454_vm0, %v436_v48 }
  0x29   : > { %2113 = vmatprep.mubr.msk.bf16.mxu1 %vm454_vm0, %v437_v50  ;;  %2126 = vmatpush3.bf16.msra.mxu1 %v2324_v45 }
  0x2a   : > { %2127 = vmatprep.subr.bf16.mxu1 %v2325_v49  ;;  %2176 = vmatpush3.bf16.msra.mxu0 %v2333_v62 }
  0x2c   : > { %2098 = vmatmul.mubr.msk.bf16.gmra.mrb[12].mxu0 %vm454_vm0, %v430_v51 }
  0x2d   : > { %2128 = vmatpush3.bf16.msra.mxu1 %v2325_v49 }
  0x2e   : > { %2129 = vmatprep.subr.bf16.mxu1 %v2326_v55 }
  0x30   : > { %2114 = vmatmul.mubr.msk.bf16.gmra.mrb[12].mxu1 %vm454_vm0, %v438_v54 }
  0x31   : > { %2130 = vmatpush3.bf16.msra.mxu1 %v2326_v55 }
  0x32   : > { %2131 = vmatprep.subr.bf16.mxu1 %v2327_v56 }
  0x35   : > { %2132 = vmatpush3.bf16.msra.mxu1 %v2327_v56 }
  0xe7   : > { %v2087_v0 = vpop.f32.mrb[0].mxu0 }
  0xe8   : > { %v546_v1 = vadd.f32 %v2087_v0, %v2534_v63  ;;  %v537_v2 = vpop.f32.mrb[1].mxu0 }
  0xe9   : > { %v538_v3 = vadd.f32 %v2534_v63, %v537_v2  ;;  %v2088_v4 = vpop.f32.mrb[2].mxu0 }
  0xea   : > { %v549_v5 = vadd.f32 %v2088_v4, %v2534_v63  ;;  %v540_v6 = vpop.f32.mrb[3].mxu0  ;;  %v666_v8 = vmax.f32 %v546_v1, 0.0 }
  0xeb   : > { %v541_v7 = vadd.f32 %v2534_v63, %v540_v6  ;;  %v2103_v10 = vpop.f32.mrb[0].mxu1  ;;  %v664_v11 = vmax.f32 %v538_v3, 0.0 }
  0xec   : > { %v667_v9 = vmax.f32 %v549_v5, 0.0  ;;  %v610_v13 = vadd.f32 %v2103_v10, %v2534_v63  ;;  %v601_v14 = vpop.f32.mrb[1].mxu1 }
  0xed   : > { %v665_v12 = vmax.f32 %v541_v7, 0.0  ;;  %v602_v16 = vadd.f32 %v2534_v63, %v601_v14  ;;  %v2104_v17 = vpop.f32.mrb[2].mxu1 }
  0xee   : > { %v697_v15 = vpack.c.bf16 %v667_v9, %v666_v8  ;;  %v682_v20 = vmax.f32 %v610_v13, 0.0  ;;  %v613_v21 = vadd.f32 %v2104_v17, %v2534_v63  ;;  %v604_v22 = vpop.f32.mrb[3].mxu1 }
  0xef   : > { %v696_v18 = vpack.c.bf16 %v665_v12, %v664_v11  ;;  %v2091_v19 = vpop.f32.mrb[4].mxu0  ;;  %v680_v25 = vmax.f32 %v602_v16, 0.0  ;;  %v605_v26 = vadd.f32 %v2534_v63, %v604_v22 }
  0xf0   : > { %v562_v23 = vadd.f32 %v2091_v19, %v2534_v63  ;;  %v553_v24 = vpop.f32.mrb[5].mxu0  ;;  %v683_v29 = vmax.f32 %v613_v21, 0.0 }
  0xf1   : > { %v554_v27 = vadd.f32 %v2534_v63, %v553_v24  ;;  %v2092_v28 = vpop.f32.mrb[6].mxu0  ;;  %2133 = vmatprep.mubr.bf16.mxu1 %v696_v18  ;;  %v681_v32 = vmax.f32 %v605_v26, 0.0 }
  0xf2   : > { %v565_v30 = vadd.f32 %v2092_v28, %v2534_v63  ;;  %v556_v31 = vpop.f32.mrb[7].mxu0  ;;  %2134 = vmatmul.mubr.bf16.vlgmr.msra.gmra.mrb[16].mxu1 %v697_v15  ;;  %v2548_v34 = vpack.c.bf16 %v683_v29, %v682_v20  ;;  %v670_v35 = vmax.f32 %v562_v23, 0.0 }
  0xf3   : > { %v557_v33 = vadd.f32 %v2534_v63, %v556_v31  ;;  %v2550_v37 = vpack.c.bf16 %v681_v32, %v680_v25  ;;  %v2107_v38 = vpop.f32.mrb[4].mxu1  ;;  %v668_v39 = vmax.f32 %v554_v27, 0.0 }
  0xf4   : > { %v671_v36 = vmax.f32 %v565_v30, 0.0  ;;  %v626_v41 = vadd.f32 %v2107_v38, %v2534_v63  ;;  %v617_v42 = vpop.f32.mrb[5].mxu1 }
  0xf5   : > { %v669_v40 = vmax.f32 %v557_v33, 0.0  ;;  %v618_v44 = vadd.f32 %v2534_v63, %v617_v42  ;;  %v2108_v45 = vpop.f32.mrb[6].mxu1 }
  0xf6   : > { %v699_v43 = vpack.c.bf16 %v671_v36, %v670_v35  ;;  %v686_v48 = vmax.f32 %v626_v41, 0.0  ;;  %v629_v49 = vadd.f32 %v2108_v45, %v2534_v63  ;;  %v620_v50 = vpop.f32.mrb[7].mxu1 }
  0xf7   : > { %v698_v46 = vpack.c.bf16 %v669_v40, %v668_v39  ;;  %v2095_v47 = vpop.f32.mrb[8].mxu0  ;;  %v684_v53 = vmax.f32 %v618_v44, 0.0  ;;  %v621_v54 = vadd.f32 %v2534_v63, %v620_v50 }
  0xf8   : > { %v578_v51 = vadd.f32 %v2095_v47, %v2534_v63  ;;  %v569_v52 = vpop.f32.mrb[9].mxu0  ;;  %v687_v57 = vmax.f32 %v629_v49, 0.0 }
  0xf9   : > { %v570_v55 = vadd.f32 %v2534_v63, %v569_v52  ;;  %v2096_v56 = vpop.f32.mrb[10].mxu0  ;;  %2137 = vmatprep.mubr.bf16.mxu1 %v698_v46  ;;  %v685_v60 = vmax.f32 %v621_v54, 0.0  ;;  %v2338_v52 = vld [vmem:[%s2857_s7 + $0x10] sm:$0xff]   ;;  %v2340_v54 = vld [vmem:[%s2857_s7 + $0x20] sm:$0xff]  }
  0xfa   : > { %v581_v58 = vadd.f32 %v2096_v56, %v2534_v63  ;;  %v572_v59 = vpop.f32.mrb[11].mxu0  ;;  %2138 = vmatmul.mubr.bf16.gmra.mrb[20].mxu1 %v699_v43  ;;  %v707_v62 = vpack.c.bf16 %v687_v57, %v686_v48  ;;  %v674_v0 = vmax.f32 %v578_v51, 0.0  ;;  %v2337_v51 = vld [vmem:[%s2857_s7 + $0x8] sm:$0xff]   ;;  %v2342_v56 = vld [vmem:[%s2857_s7 + $0x30] sm:$0xff]   ;;  %v2604_v57 = vld [vmem:[%s2854_s4] ss:$0 sm:$0xff] }
  0xfb   : > { %v573_v61 = vadd.f32 %v2534_v63, %v572_v59  ;;  %v706_v2 = vpack.c.bf16 %v685_v60, %v684_v53  ;;  %v2111_v3 = vpop.f32.mrb[8].mxu1  ;;  %v672_v4 = vmax.f32 %v570_v55, 0.0  ;;  %v2339_v53 = vld [vmem:[%s2857_s7 + $0x18] sm:$0xff]   ;;  %v2341_v55 = vld [vmem:[%s2857_s7 + $0x28] sm:$0xff]  }
  0xfc   : > { %v675_v1 = vmax.f32 %v581_v58, 0.0  ;;  %v642_v6 = vadd.f32 %v2111_v3, %v2534_v63  ;;  %v633_v7 = vpop.f32.mrb[9].mxu1 }
  0xfd   : > { %v673_v5 = vmax.f32 %v573_v61, 0.0  ;;  %v634_v9 = vadd.f32 %v2534_v63, %v633_v7  ;;  %v2112_v10 = vpop.f32.mrb[10].mxu1 }
  0xfe   : > { %v701_v8 = vpack.c.bf16 %v675_v1, %v674_v0  ;;  %v690_v13 = vmax.f32 %v642_v6, 0.0  ;;  %v645_v14 = vadd.f32 %v2112_v10, %v2534_v63  ;;  %v636_v15 = vpop.f32.mrb[11].mxu1 }
  0xff   : > { %v700_v11 = vpack.c.bf16 %v673_v5, %v672_v4  ;;  %v2099_v12 = vpop.f32.mrb[12].mxu0  ;;  %v688_v18 = vmax.f32 %v634_v9, 0.0  ;;  %v637_v19 = vadd.f32 %v2534_v63, %v636_v15 }
 0x100   : > { %v594_v16 = vadd.f32 %v2099_v12, %v2534_v63  ;;  %v585_v17 = vpop.f32.mrb[13].mxu0  ;;  %v691_v22 = vmax.f32 %v645_v14, 0.0 }
 0x101   : > { %v586_v20 = vadd.f32 %v2534_v63, %v585_v17  ;;  %v2100_v21 = vpop.f32.mrb[14].mxu0  ;;  %2141 = vmatprep.mubr.bf16.mxu1 %v700_v11  ;;  %v689_v25 = vmax.f32 %v637_v19, 0.0 }
 0x102   : > { %v597_v23 = vadd.f32 %v2100_v21, %v2534_v63  ;;  %v588_v24 = vpop.f32.mrb[15].mxu0  ;;  %2142 = vmatmul.mubr.bf16.gmra.mrb[24].mxu1 %v701_v8  ;;  %v709_v27 = vpack.c.bf16 %v691_v22, %v690_v13  ;;  %v678_v28 = vmax.f32 %v594_v16, 0.0 }
 0x103   : > { %v589_v26 = vadd.f32 %v2534_v63, %v588_v24  ;;  %v708_v30 = vpack.c.bf16 %v689_v25, %v688_v18  ;;  %v2115_v31 = vpop.f32.mrb[12].mxu1  ;;  %v676_v32 = vmax.f32 %v586_v20, 0.0 }
 0x104   : > { %v679_v29 = vmax.f32 %v597_v23, 0.0  ;;  %v658_v35 = vadd.f32 %v2115_v31, %v2534_v63  ;;  %v649_v36 = vpop.f32.mrb[13].mxu1 }
 0x105   : > { %v677_v33 = vmax.f32 %v589_v26, 0.0  ;;  %v650_v39 = vadd.f32 %v2534_v63, %v649_v36  ;;  %v2116_v40 = vpop.f32.mrb[14].mxu1 }
 0x106   : > { %v703_v38 = vpack.c.bf16 %v679_v29, %v678_v28  ;;  %v694_v42 = vmax.f32 %v658_v35, 0.0  ;;  %v661_v43 = vadd.f32 %v2116_v40, %v2534_v63  ;;  %v652_v44 = vpop.f32.mrb[15].mxu1 }
 0x107   : > { %v702_v41 = vpack.c.bf16 %v677_v33, %v676_v32  ;;  %v692_v45 = vmax.f32 %v650_v39, 0.0  ;;  %v653_v46 = vadd.f32 %v2534_v63, %v652_v44  ;;  %v2334_v63 = vld [vmem:[%s2855_s5 + $0x30] sm:$0xff]  }
 0x108   : > { %v695_v47 = vmax.f32 %v661_v43, 0.0  ;;  %2177 = vmatprep.subr.bf16.mxu0 %v2334_v63 }
 0x109   : > { %2145 = vmatprep.mubr.bf16.mxu1 %v702_v41  ;;  %v693_v48 = vmax.f32 %v653_v46, 0.0  ;;  %2178 = vmatpush3.bf16.msra.mxu0 %v2334_v63 }
 0x10a   : > { %2146 = vmatmul.mubr.bf16.gmra.mrb[28].mxu1 %v703_v38  ;;  %v711_v49 = vpack.c.bf16 %v695_v47, %v694_v42 }
 0x10b   : > { %2149 = vmatprep.mubr.bf16.mxu1 %v2550_v37  ;;  %v710_v50 = vpack.c.bf16 %v693_v48, %v692_v45  ;;  %v2335_v37 = vld [vmem:[%s2855_s5 + $0x38] sm:$0xff]  }
 0x10c   : > { %2179 = vmatprep.subr.bf16.mxu0 %v2335_v37 }
 0x10d   : > { %2180 = vmatpush3.bf16.msra.mxu0 %v2335_v37 }
 0x112   : > { %2150 = vmatmul.mubr.bf16.gmra.mrb[32].mxu1 %v2548_v34  ;;  %v2336_v34 = vld [vmem:[%s2857_s7] sm:$0xff]  }
 0x113   : > { %2153 = vmatprep.mubr.bf16.mxu1 %v706_v2  ;;  %2213 = vmatprep.subr.bf16.mxu1 %v2336_v34 }
 0x114   : > { %2214 = vmatpush3.bf16.msra.mxu1 %v2336_v34 }
 0x115   : > { %2215 = vmatprep.subr.bf16.mxu1 %v2337_v51 }
 0x118   : > { %2216 = vmatpush3.bf16.msra.mxu1 %v2337_v51 }
 0x119   : > { %2217 = vmatprep.subr.bf16.mxu1 %v2338_v52 }
 0x11a   : > { %2154 = vmatmul.mubr.bf16.gmra.mrb[36].mxu1 %v707_v62 }
 0x11b   : > { %2157 = vmatprep.mubr.bf16.mxu1 %v708_v30 }
 0x11c   : > { %2218 = vmatpush3.bf16.msra.mxu1 %v2338_v52 }
 0x11d   : > { %2219 = vmatprep.subr.bf16.mxu1 %v2339_v53 }
 0x120   : > { %2220 = vmatpush3.bf16.msra.mxu1 %v2339_v53 }
 0x121   : > { %2221 = vmatprep.subr.bf16.mxu1 %v2340_v54 }
 0x122   : > { %2158 = vmatmul.mubr.bf16.gmra.mrb[40].mxu1 %v709_v27 }
 0x123   : > { %2161 = vmatprep.mubr.bf16.mxu1 %v710_v50 }
 0x124   : > { %2222 = vmatpush3.bf16.msra.mxu1 %v2340_v54 }
 0x125   : > { %2223 = vmatprep.subr.bf16.mxu1 %v2341_v55 }
 0x128   : > { %2224 = vmatpush3.bf16.msra.mxu1 %v2341_v55 }
 0x129   : > { %2225 = vmatprep.subr.bf16.mxu1 %v2342_v56 }
 0x12a   : > { %2162 = vmatmul.mubr.bf16.gmra.mrb[44].mxu1 %v711_v49 }
 0x12c   : > { %2226 = vmatpush3.bf16.msra.mxu1 %v2342_v56 }
 0x1c5   : > { %v2135_v58 = vpop.f32.mrb[16].mxu1 }
 0x1c6   : > { %v826_v59 = vadd.f32 %v2135_v58, %v2604_v57  ;;  %v817_v60 = vpop.f32.mrb[17].mxu1 }
 0x1c7   : > { %v818_v61 = vadd.f32 %v2604_v57, %v817_v60  ;;  %v2136_v62 = vpop.f32.mrb[18].mxu1 }
 0x1c8   : > { %v829_v0 = vadd.f32 %v2136_v62, %v2604_v57  ;;  %v820_v1 = vpop.f32.mrb[19].mxu1  ;;  %v946_v3 = vmax.f32 %v826_v59, 0.0 }
 0x1c9   : > { %v821_v2 = vadd.f32 %v2604_v57, %v820_v1  ;;  %v944_v5 = vmax.f32 %v818_v61, 0.0 }
 0x1ca   : > { %v947_v4 = vmax.f32 %v829_v0, 0.0 }
 0x1cb   : > { %v945_v6 = vmax.f32 %v821_v2, 0.0 }
 0x1cc   : > { %v977_v7 = vpack.c.bf16 %v947_v4, %v946_v3 }
 0x1cd   : > { %v976_v8 = vpack.c.bf16 %v945_v6, %v944_v5  ;;  %v2139_v9 = vpop.f32.mrb[20].mxu1 }
 0x1ce   : > { %v842_v10 = vadd.f32 %v2139_v9, %v2604_v57  ;;  %v833_v11 = vpop.f32.mrb[21].mxu1 }
 0x1cf   : > { %v834_v12 = vadd.f32 %v2604_v57, %v833_v11  ;;  %v2140_v13 = vpop.f32.mrb[22].mxu1  ;;  %2181 = vmatprep.mubr.bf16.mxu0 %v976_v8 }
 0x1d0   : > { %v845_v14 = vadd.f32 %v2140_v13, %v2604_v57  ;;  %v836_v15 = vpop.f32.mrb[23].mxu1  ;;  %2182 = vmatmul.mubr.bf16.vlgmr.msra.gmra.mrb[16].mxu0 %v977_v7  ;;  %v950_v17 = vmax.f32 %v842_v10, 0.0 }
 0x1d1   : > { %v837_v16 = vadd.f32 %v2604_v57, %v836_v15  ;;  %v948_v19 = vmax.f32 %v834_v12, 0.0 }
 0x1d2   : > { %v951_v18 = vmax.f32 %v845_v14, 0.0 }
 0x1d3   : > { %v949_v20 = vmax.f32 %v837_v16, 0.0 }
 0x1d4   : > { %v979_v21 = vpack.c.bf16 %v951_v18, %v950_v17 }
 0x1d5   : > { %v978_v22 = vpack.c.bf16 %v949_v20, %v948_v19  ;;  %v2143_v23 = vpop.f32.mrb[24].mxu1 }
 0x1d6   : > { %v858_v24 = vadd.f32 %v2143_v23, %v2604_v57  ;;  %v849_v25 = vpop.f32.mrb[25].mxu1 }
 0x1d7   : > { %v850_v26 = vadd.f32 %v2604_v57, %v849_v25  ;;  %v2144_v27 = vpop.f32.mrb[26].mxu1  ;;  %2185 = vmatprep.mubr.bf16.mxu0 %v978_v22 }
 0x1d8   : > { %v861_v28 = vadd.f32 %v2144_v27, %v2604_v57  ;;  %v852_v29 = vpop.f32.mrb[27].mxu1  ;;  %2186 = vmatmul.mubr.bf16.gmra.mrb[20].mxu0 %v979_v21  ;;  %v954_v31 = vmax.f32 %v858_v24, 0.0 }
 0x1d9   : > { %v853_v30 = vadd.f32 %v2604_v57, %v852_v29  ;;  %v952_v33 = vmax.f32 %v850_v26, 0.0 }
 0x1da   : > { %v955_v32 = vmax.f32 %v861_v28, 0.0 }
 0x1db   : > { %v953_v35 = vmax.f32 %v853_v30, 0.0 }
 0x1dc   : > { %v981_v36 = vpack.c.bf16 %v955_v32, %v954_v31 }
 0x1dd   : > { %v980_v38 = vpack.c.bf16 %v953_v35, %v952_v33  ;;  %v2147_v39 = vpop.f32.mrb[28].mxu1 }
 0x1de   : > { %v874_v40 = vadd.f32 %v2147_v39, %v2604_v57  ;;  %v865_v41 = vpop.f32.mrb[29].mxu1 }
 0x1df   : > { %v866_v42 = vadd.f32 %v2604_v57, %v865_v41  ;;  %v2148_v43 = vpop.f32.mrb[30].mxu1  ;;  %2189 = vmatprep.mubr.bf16.mxu0 %v980_v38 }
 0x1e0   : > { %v877_v44 = vadd.f32 %v2148_v43, %v2604_v57  ;;  %v868_v45 = vpop.f32.mrb[31].mxu1  ;;  %2190 = vmatmul.mubr.bf16.gmra.mrb[24].mxu0 %v981_v36  ;;  %v958_v47 = vmax.f32 %v874_v40, 0.0 }
 0x1e1   : > { %v869_v46 = vadd.f32 %v2604_v57, %v868_v45  ;;  %v956_v49 = vmax.f32 %v866_v42, 0.0 }
 0x1e2   : > { %v959_v48 = vmax.f32 %v877_v44, 0.0 }
 0x1e3   : > { %v957_v50 = vmax.f32 %v869_v46, 0.0  ;;  %v2343_v46 = vld [vmem:[%s2857_s7 + $0x38] sm:$0xff]  }
 0x1e4   : > { %v983_v63 = vpack.c.bf16 %v959_v48, %v958_v47  ;;  %2227 = vmatprep.subr.bf16.mxu1 %v2343_v46  ;;  %v2344_v47 = vld [vmem:[%s2859_s9] sm:$0xff]   ;;  %v2346_v48 = vld [vmem:[%s2859_s9 + $0x10] sm:$0xff]  }
 0x1e5   : > { %v982_v37 = vpack.c.bf16 %v957_v50, %v956_v49  ;;  %v2151_v34 = vpop.f32.mrb[32].mxu1  ;;  %2228 = vmatpush3.bf16.msra.mxu1 %v2343_v46  ;;  %2261 = vmatprep.subr.bf16.mxu0 %v2344_v47  ;;  %v2347_v49 = vld [vmem:[%s2859_s9 + $0x18] sm:$0xff]   ;;  %v2348_v50 = vld [vmem:[%s2859_s9 + $0x20] sm:$0xff]  }
 0x1e6   : > { %v890_v51 = vadd.f32 %v2151_v34, %v2604_v57  ;;  %v881_v52 = vpop.f32.mrb[33].mxu1  ;;  %2262 = vmatpush3.bf16.msra.mxu0 %v2344_v47  ;;  %v2665_v34 = vld [vmem:[%s2856_s6] ss:$0 sm:$0xff] }
 0x1e7   : > { %v882_v53 = vadd.f32 %v2604_v57, %v881_v52  ;;  %v2152_v54 = vpop.f32.mrb[34].mxu1  ;;  %2193 = vmatprep.mubr.bf16.mxu0 %v982_v37  ;;  %v2350_v37 = vld [vmem:[%s2859_s9 + $0x30] sm:$0xff]  }
 0x1e8   : > { %v893_v55 = vadd.f32 %v2152_v54, %v2604_v57  ;;  %v884_v56 = vpop.f32.mrb[35].mxu1  ;;  %2194 = vmatmul.mubr.bf16.gmra.mrb[28].mxu0 %v983_v63  ;;  %v962_v59 = vmax.f32 %v890_v51, 0.0  ;;  %v2349_v63 = vld [vmem:[%s2859_s9 + $0x28] sm:$0xff]  }
 0x1e9   : > { %v885_v58 = vadd.f32 %v2604_v57, %v884_v56  ;;  %v960_v61 = vmax.f32 %v882_v53, 0.0 }
 0x1ea   : > { %v963_v60 = vmax.f32 %v893_v55, 0.0 }
 0x1eb   : > { %v961_v62 = vmax.f32 %v885_v58, 0.0 }
 0x1ec   : > { %v985_v0 = vpack.c.bf16 %v963_v60, %v962_v59 }
 0x1ed   : > { %v984_v1 = vpack.c.bf16 %v961_v62, %v960_v61  ;;  %v2155_v2 = vpop.f32.mrb[36].mxu1 }
 0x1ee   : > { %v906_v3 = vadd.f32 %v2155_v2, %v2604_v57  ;;  %v897_v4 = vpop.f32.mrb[37].mxu1 }
 0x1ef   : > { %v898_v5 = vadd.f32 %v2604_v57, %v897_v4  ;;  %v2156_v6 = vpop.f32.mrb[38].mxu1  ;;  %2197 = vmatprep.mubr.bf16.mxu0 %v984_v1 }
 0x1f0   : > { %v909_v7 = vadd.f32 %v2156_v6, %v2604_v57  ;;  %v900_v8 = vpop.f32.mrb[39].mxu1  ;;  %2198 = vmatmul.mubr.bf16.gmra.mrb[32].mxu0 %v985_v0  ;;  %v966_v10 = vmax.f32 %v906_v3, 0.0 }
 0x1f1   : > { %v901_v9 = vadd.f32 %v2604_v57, %v900_v8  ;;  %v964_v12 = vmax.f32 %v898_v5, 0.0 }
 0x1f2   : > { %v967_v11 = vmax.f32 %v909_v7, 0.0 }
 0x1f3   : > { %v965_v13 = vmax.f32 %v901_v9, 0.0 }
 0x1f4   : > { %v987_v14 = vpack.c.bf16 %v967_v11, %v966_v10 }
 0x1f5   : > { %v986_v15 = vpack.c.bf16 %v965_v13, %v964_v12  ;;  %v2159_v16 = vpop.f32.mrb[40].mxu1 }
 0x1f6   : > { %v922_v17 = vadd.f32 %v2159_v16, %v2604_v57  ;;  %v913_v18 = vpop.f32.mrb[41].mxu1 }
 0x1f7   : > { %v914_v19 = vadd.f32 %v2604_v57, %v913_v18  ;;  %v2160_v20 = vpop.f32.mrb[42].mxu1  ;;  %2201 = vmatprep.mubr.bf16.mxu0 %v986_v15 }
 0x1f8   : > { %v925_v21 = vadd.f32 %v2160_v20, %v2604_v57  ;;  %v916_v22 = vpop.f32.mrb[43].mxu1  ;;  %2202 = vmatmul.mubr.bf16.gmra.mrb[36].mxu0 %v987_v14  ;;  %v970_v24 = vmax.f32 %v922_v17, 0.0 }
 0x1f9   : > { %v917_v23 = vadd.f32 %v2604_v57, %v916_v22  ;;  %v968_v26 = vmax.f32 %v914_v19, 0.0 }
 0x1fa   : > { %v971_v25 = vmax.f32 %v925_v21, 0.0 }
 0x1fb   : > { %v969_v27 = vmax.f32 %v917_v23, 0.0 }
 0x1fc   : > { %v989_v28 = vpack.c.bf16 %v971_v25, %v970_v24 }
 0x1fd   : > { %v988_v29 = vpack.c.bf16 %v969_v27, %v968_v26  ;;  %v2163_v30 = vpop.f32.mrb[44].mxu1 }
 0x1fe   : > { %v938_v31 = vadd.f32 %v2163_v30, %v2604_v57  ;;  %v929_v32 = vpop.f32.mrb[45].mxu1 }
 0x1ff   : > { %v930_v33 = vadd.f32 %v2604_v57, %v929_v32  ;;  %v2164_v35 = vpop.f32.mrb[46].mxu1  ;;  %2205 = vmatprep.mubr.bf16.mxu0 %v988_v29 }
 0x200   : > { %v941_v36 = vadd.f32 %v2164_v35, %v2604_v57  ;;  %v932_v38 = vpop.f32.mrb[47].mxu1  ;;  %2206 = vmatmul.mubr.bf16.gmra.mrb[40].mxu0 %v989_v28  ;;  %v974_v40 = vmax.f32 %v938_v31, 0.0 }
 0x201   : > { %v933_v39 = vadd.f32 %v2604_v57, %v932_v38  ;;  %v972_v42 = vmax.f32 %v930_v33, 0.0  ;;  %v2345_v57 = vld [vmem:[%s2859_s9 + $0x8] sm:$0xff]  }
 0x202   : > { %v975_v41 = vmax.f32 %v941_v36, 0.0  ;;  %2263 = vmatprep.subr.bf16.mxu0 %v2345_v57 }
 0x203   : > { %v973_v43 = vmax.f32 %v933_v39, 0.0  ;;  %2264 = vmatpush3.bf16.msra.mxu0 %v2345_v57 }
 0x204   : > { %v991_v44 = vpack.c.bf16 %v975_v41, %v974_v40  ;;  %2265 = vmatprep.subr.bf16.mxu0 %v2346_v48 }
 0x205   : > { %v990_v45 = vpack.c.bf16 %v973_v43, %v972_v42 }
 0x207   : > { %2209 = vmatprep.mubr.bf16.mxu0 %v990_v45  ;;  %2266 = vmatpush3.bf16.msra.mxu0 %v2346_v48 }
 0x208   : > { %2210 = vmatmul.mubr.bf16.gmra.mrb[44].mxu0 %v991_v44  ;;  %2267 = vmatprep.subr.bf16.mxu0 %v2347_v49 }
 0x20b   : > { %2268 = vmatpush3.bf16.msra.mxu0 %v2347_v49 }
 0x20c   : > { %2269 = vmatprep.subr.bf16.mxu0 %v2348_v50 }
 0x20f   : > { %2270 = vmatpush3.bf16.msra.mxu0 %v2348_v50 }
 0x210   : > { %2271 = vmatprep.subr.bf16.mxu0 %v2349_v63 }
 0x213   : > { %2272 = vmatpush3.bf16.msra.mxu0 %v2349_v63 }
 0x214   : > { %2273 = vmatprep.subr.bf16.mxu0 %v2350_v37 }
 0x217   : > { %2274 = vmatpush3.bf16.msra.mxu0 %v2350_v37 }
 0x2a3   : > { %v2183_v51 = vpop.f32.mrb[16].mxu0 }
 0x2a4   : > { %v1106_v52 = vadd.f32 %v2183_v51, %v2665_v34  ;;  %v1097_v53 = vpop.f32.mrb[17].mxu0 }
 0x2a5   : > { %v1098_v54 = vadd.f32 %v2665_v34, %v1097_v53  ;;  %v2184_v55 = vpop.f32.mrb[18].mxu0 }
 0x2a6   : > { %v1109_v56 = vadd.f32 %v2184_v55, %v2665_v34  ;;  %v1100_v58 = vpop.f32.mrb[19].mxu0  ;;  %v1226_v60 = vmax.f32 %v1106_v52, 0.0 }
 0x2a7   : > { %v1101_v59 = vadd.f32 %v2665_v34, %v1100_v58  ;;  %v1224_v62 = vmax.f32 %v1098_v54, 0.0 }
 0x2a8   : > { %v1227_v61 = vmax.f32 %v1109_v56, 0.0 }
 0x2a9   : > { %v1225_v0 = vmax.f32 %v1101_v59, 0.0 }
 0x2aa   : > { %v1257_v1 = vpack.c.bf16 %v1227_v61, %v1226_v60 }
 0x2ab   : > { %v1256_v2 = vpack.c.bf16 %v1225_v0, %v1224_v62  ;;  %v2187_v3 = vpop.f32.mrb[20].mxu0 }
 0x2ac   : > { %v1122_v4 = vadd.f32 %v2187_v3, %v2665_v34  ;;  %v1113_v5 = vpop.f32.mrb[21].mxu0 }
 0x2ad   : > { %v1114_v6 = vadd.f32 %v2665_v34, %v1113_v5  ;;  %v2188_v7 = vpop.f32.mrb[22].mxu0  ;;  %2229 = vmatprep.mubr.bf16.mxu1 %v1256_v2 }
 0x2ae   : > { %v1125_v8 = vadd.f32 %v2188_v7, %v2665_v34  ;;  %v1116_v9 = vpop.f32.mrb[23].mxu0  ;;  %2230 = vmatmul.mubr.bf16.vlgmr.msra.gmra.mrb[48].mxu1 %v1257_v1  ;;  %v1230_v11 = vmax.f32 %v1122_v4, 0.0 }
 0x2af   : > { %v1117_v10 = vadd.f32 %v2665_v34, %v1116_v9  ;;  %v1228_v13 = vmax.f32 %v1114_v6, 0.0 }
 0x2b0   : > { %v1231_v12 = vmax.f32 %v1125_v8, 0.0 }
 0x2b1   : > { %v1229_v14 = vmax.f32 %v1117_v10, 0.0 }
 0x2b2   : > { %v1259_v15 = vpack.c.bf16 %v1231_v12, %v1230_v11 }
 0x2b3   : > { %v1258_v16 = vpack.c.bf16 %v1229_v14, %v1228_v13  ;;  %v2191_v17 = vpop.f32.mrb[24].mxu0 }
 0x2b4   : > { %v1138_v18 = vadd.f32 %v2191_v17, %v2665_v34  ;;  %v1129_v19 = vpop.f32.mrb[25].mxu0 }
 0x2b5   : > { %v1130_v20 = vadd.f32 %v2665_v34, %v1129_v19  ;;  %v2192_v21 = vpop.f32.mrb[26].mxu0  ;;  %2233 = vmatprep.mubr.bf16.mxu1 %v1258_v16 }
 0x2b6   : > { %v1141_v22 = vadd.f32 %v2192_v21, %v2665_v34  ;;  %v1132_v23 = vpop.f32.mrb[27].mxu0  ;;  %2234 = vmatmul.mubr.bf16.gmra.mrb[52].mxu1 %v1259_v15  ;;  %v1234_v25 = vmax.f32 %v1138_v18, 0.0 }
 0x2b7   : > { %v1133_v24 = vadd.f32 %v2665_v34, %v1132_v23  ;;  %v1232_v27 = vmax.f32 %v1130_v20, 0.0 }
 0x2b8   : > { %v1235_v26 = vmax.f32 %v1141_v22, 0.0 }
 0x2b9   : > { %v1233_v28 = vmax.f32 %v1133_v24, 0.0 }
 0x2ba   : > { %v1261_v29 = vpack.c.bf16 %v1235_v26, %v1234_v25 }
 0x2bb   : > { %v1260_v30 = vpack.c.bf16 %v1233_v28, %v1232_v27  ;;  %v2195_v31 = vpop.f32.mrb[28].mxu0 }
 0x2bc   : > { %v1154_v32 = vadd.f32 %v2195_v31, %v2665_v34  ;;  %v1145_v33 = vpop.f32.mrb[29].mxu0 }
 0x2bd   : > { %v1146_v35 = vadd.f32 %v2665_v34, %v1145_v33  ;;  %v2196_v36 = vpop.f32.mrb[30].mxu0  ;;  %2237 = vmatprep.mubr.bf16.mxu1 %v1260_v30 }
 0x2be   : > { %v1157_v38 = vadd.f32 %v2196_v36, %v2665_v34  ;;  %v1148_v39 = vpop.f32.mrb[31].mxu0  ;;  %2238 = vmatmul.mubr.bf16.gmra.mrb[56].mxu1 %v1261_v29  ;;  %v1238_v41 = vmax.f32 %v1154_v32, 0.0 }
 0x2bf   : > { %v1149_v40 = vadd.f32 %v2665_v34, %v1148_v39  ;;  %v1236_v43 = vmax.f32 %v1146_v35, 0.0 }
 0x2c0   : > { %v1239_v42 = vmax.f32 %v1157_v38, 0.0 }
 0x2c1   : > { %v1237_v44 = vmax.f32 %v1149_v40, 0.0  ;;  %v2351_v40 = vld [vmem:[%s2859_s9 + $0x38] sm:$0xff]  }
 0x2c2   : > { %v1263_v45 = vpack.c.bf16 %v1239_v42, %v1238_v41  ;;  %2275 = vmatprep.subr.bf16.mxu0 %v2351_v40  ;;  %v2705_v41 = vld [vmem:[%s2858_s8] ss:$0 sm:$0xff] }
 0x2c3   : > { %v1262_v46 = vpack.c.bf16 %v1237_v44, %v1236_v43  ;;  %v2199_v47 = vpop.f32.mrb[32].mxu0  ;;  %2276 = vmatpush3.bf16.msra.mxu0 %v2351_v40 }
 0x2c4   : > { %v1170_v57 = vadd.f32 %v2199_v47, %v2665_v34  ;;  %v1161_v48 = vpop.f32.mrb[33].mxu0 }
 0x2c5   : > { %v1162_v49 = vadd.f32 %v2665_v34, %v1161_v48  ;;  %v2200_v50 = vpop.f32.mrb[34].mxu0  ;;  %2241 = vmatprep.mubr.bf16.mxu1 %v1262_v46 }
 0x2c6   : > { %v1173_v63 = vadd.f32 %v2200_v50, %v2665_v34  ;;  %v1164_v37 = vpop.f32.mrb[35].mxu0  ;;  %2242 = vmatmul.mubr.bf16.gmra.mrb[60].mxu1 %v1263_v45  ;;  %v1242_v52 = vmax.f32 %v1170_v57, 0.0 }
 0x2c7   : > { %v1165_v51 = vadd.f32 %v2665_v34, %v1164_v37  ;;  %v1240_v54 = vmax.f32 %v1162_v49, 0.0 }
 0x2c8   : > { %v1243_v53 = vmax.f32 %v1173_v63, 0.0 }
 0x2c9   : > { %v1241_v55 = vmax.f32 %v1165_v51, 0.0 }
 0x2ca   : > { %v1265_v56 = vpack.c.bf16 %v1243_v53, %v1242_v52 }
 0x2cb   : > { %v1264_v58 = vpack.c.bf16 %v1241_v55, %v1240_v54  ;;  %v2203_v59 = vpop.f32.mrb[36].mxu0 }
 0x2cc   : > { %v1186_v60 = vadd.f32 %v2203_v59, %v2665_v34  ;;  %v1177_v61 = vpop.f32.mrb[37].mxu0 }
 0x2cd   : > { %v1178_v62 = vadd.f32 %v2665_v34, %v1177_v61  ;;  %v2204_v0 = vpop.f32.mrb[38].mxu0  ;;  %2245 = vmatprep.mubr.bf16.mxu1 %v1264_v58 }
 0x2ce   : > { %v1189_v1 = vadd.f32 %v2204_v0, %v2665_v34  ;;  %v1180_v2 = vpop.f32.mrb[39].mxu0  ;;  %2246 = vmatmul.mubr.bf16.gmra.mrb[64].mxu1 %v1265_v56  ;;  %v1246_v4 = vmax.f32 %v1186_v60, 0.0 }
 0x2cf   : > { %v1181_v3 = vadd.f32 %v2665_v34, %v1180_v2  ;;  %v1244_v6 = vmax.f32 %v1178_v62, 0.0 }
 0x2d0   : > { %v1247_v5 = vmax.f32 %v1189_v1, 0.0 }
 0x2d1   : > { %v1245_v7 = vmax.f32 %v1181_v3, 0.0 }
 0x2d2   : > { %v1267_v8 = vpack.c.bf16 %v1247_v5, %v1246_v4 }
 0x2d3   : > { %v1266_v9 = vpack.c.bf16 %v1245_v7, %v1244_v6  ;;  %v2207_v10 = vpop.f32.mrb[40].mxu0 }
 0x2d4   : > { %v1202_v11 = vadd.f32 %v2207_v10, %v2665_v34  ;;  %v1193_v12 = vpop.f32.mrb[41].mxu0 }
 0x2d5   : > { %v1194_v13 = vadd.f32 %v2665_v34, %v1193_v12  ;;  %v2208_v14 = vpop.f32.mrb[42].mxu0  ;;  %2249 = vmatprep.mubr.bf16.mxu1 %v1266_v9 }
 0x2d6   : > { %v1205_v15 = vadd.f32 %v2208_v14, %v2665_v34  ;;  %v1196_v16 = vpop.f32.mrb[43].mxu0  ;;  %2250 = vmatmul.mubr.bf16.gmra.mrb[68].mxu1 %v1267_v8  ;;  %v1250_v18 = vmax.f32 %v1202_v11, 0.0 }
 0x2d7   : > { %v1197_v17 = vadd.f32 %v2665_v34, %v1196_v16  ;;  %v1248_v20 = vmax.f32 %v1194_v13, 0.0 }
 0x2d8   : > { %v1251_v19 = vmax.f32 %v1205_v15, 0.0 }
 0x2d9   : > { %v1249_v21 = vmax.f32 %v1197_v17, 0.0 }
 0x2da   : > { %v1269_v22 = vpack.c.bf16 %v1251_v19, %v1250_v18 }
 0x2db   : > { %v1268_v23 = vpack.c.bf16 %v1249_v21, %v1248_v20  ;;  %v2211_v24 = vpop.f32.mrb[44].mxu0 }
 0x2dc   : > { %v1218_v25 = vadd.f32 %v2211_v24, %v2665_v34  ;;  %v1209_v26 = vpop.f32.mrb[45].mxu0 }
 0x2dd   : > { %v1210_v27 = vadd.f32 %v2665_v34, %v1209_v26  ;;  %v2212_v28 = vpop.f32.mrb[46].mxu0  ;;  %2253 = vmatprep.mubr.bf16.mxu1 %v1268_v23 }
 0x2de   : > { %v1221_v29 = vadd.f32 %v2212_v28, %v2665_v34  ;;  %v1212_v30 = vpop.f32.mrb[47].mxu0  ;;  %2254 = vmatmul.mubr.bf16.gmra.mrb[72].mxu1 %v1269_v22  ;;  %v1254_v32 = vmax.f32 %v1218_v25, 0.0 }
 0x2df   : > { %v1213_v31 = vadd.f32 %v2665_v34, %v1212_v30  ;;  %v1252_v35 = vmax.f32 %v1210_v27, 0.0 }
 0x2e0   : > { %v1255_v33 = vmax.f32 %v1221_v29, 0.0 }
 0x2e1   : > { %v1253_v36 = vmax.f32 %v1213_v31, 0.0 }
 0x2e2   : > { %v1271_v38 = vpack.c.bf16 %v1255_v33, %v1254_v32 }
 0x2e3   : > { %v1270_v39 = vpack.c.bf16 %v1253_v36, %v1252_v35 }
 0x2e5   : > { %2257 = vmatprep.mubr.bf16.mxu1 %v1270_v39 }
 0x2e6   : > { %2258 = vmatmul.mubr.bf16.gmra.mrb[76].mxu1 %v1271_v38 }
 0x381   : > { %v2231_v34 = vpop.f32.mrb[48].mxu1 }
 0x382   : > { %v1386_v42 = vadd.f32 %v2231_v34, %v2705_v41  ;;  %v1377_v43 = vpop.f32.mrb[49].mxu1 }
 0x383   : > { %v1378_v44 = vadd.f32 %v2705_v41, %v1377_v43  ;;  %v2232_v45 = vpop.f32.mrb[50].mxu1 }
 0x384   : > { %v1389_v46 = vadd.f32 %v2232_v45, %v2705_v41  ;;  %v1380_v47 = vpop.f32.mrb[51].mxu1  ;;  %v1506_v48 = vmax.f32 %v1386_v42, 0.0 }
 0x385   : > { %v1381_v57 = vadd.f32 %v2705_v41, %v1380_v47  ;;  %v1504_v50 = vmax.f32 %v1378_v44, 0.0 }
 0x386   : > { %v1507_v49 = vmax.f32 %v1389_v46, 0.0 }
 0x387   : > { %v1505_v63 = vmax.f32 %v1381_v57, 0.0 }
 0x388   : > { %v1537_v37 = vpack.c.bf16 %v1507_v49, %v1506_v48 }
 0x389   : > { %v1536_v51 = vpack.c.bf16 %v1505_v63, %v1504_v50  ;;  %v2235_v52 = vpop.f32.mrb[52].mxu1 }
 0x38a   : > { %v1402_v53 = vadd.f32 %v2235_v52, %v2705_v41  ;;  %v1393_v54 = vpop.f32.mrb[53].mxu1 }
 0x38b   : > { %v1394_v55 = vadd.f32 %v2705_v41, %v1393_v54  ;;  %v2236_v56 = vpop.f32.mrb[54].mxu1  ;;  %2277 = vmatprep.mubr.bf16.mxu0 %v1536_v51 }
 0x38c   : > { %v1405_v58 = vadd.f32 %v2236_v56, %v2705_v41  ;;  %v1396_v59 = vpop.f32.mrb[55].mxu1  ;;  %2278 = vmatmul.mubr.bf16.vlgmr.msra.gmra.mrb[48].mxu0 %v1537_v37  ;;  %v1510_v61 = vmax.f32 %v1402_v53, 0.0 }
 0x38d   : > { %v1397_v60 = vadd.f32 %v2705_v41, %v1396_v59  ;;  %v1508_v0 = vmax.f32 %v1394_v55, 0.0 }
 0x38e   : > { %v1511_v62 = vmax.f32 %v1405_v58, 0.0 }
 0x38f   : > { %v1509_v1 = vmax.f32 %v1397_v60, 0.0 }
 0x390   : > { %v1539_v2 = vpack.c.bf16 %v1511_v62, %v1510_v61 }
 0x391   : > { %v1538_v3 = vpack.c.bf16 %v1509_v1, %v1508_v0  ;;  %v2239_v4 = vpop.f32.mrb[56].mxu1 }
 0x392   : > { %v1418_v5 = vadd.f32 %v2239_v4, %v2705_v41  ;;  %v1409_v6 = vpop.f32.mrb[57].mxu1 }
 0x393   : > { %v1410_v7 = vadd.f32 %v2705_v41, %v1409_v6  ;;  %v2240_v8 = vpop.f32.mrb[58].mxu1  ;;  %2281 = vmatprep.mubr.bf16.mxu0 %v1538_v3 }
 0x394   : > { %v1421_v9 = vadd.f32 %v2240_v8, %v2705_v41  ;;  %v1412_v10 = vpop.f32.mrb[59].mxu1  ;;  %2282 = vmatmul.mubr.bf16.gmra.mrb[52].mxu0 %v1539_v2  ;;  %v1514_v12 = vmax.f32 %v1418_v5, 0.0 }
 0x395   : > { %v1413_v11 = vadd.f32 %v2705_v41, %v1412_v10  ;;  %v1512_v14 = vmax.f32 %v1410_v7, 0.0 }
 0x396   : > { %v1515_v13 = vmax.f32 %v1421_v9, 0.0 }
 0x397   : > { %v1513_v15 = vmax.f32 %v1413_v11, 0.0 }
 0x398   : > { %v1541_v16 = vpack.c.bf16 %v1515_v13, %v1514_v12 }
 0x399   : > { %v1540_v17 = vpack.c.bf16 %v1513_v15, %v1512_v14  ;;  %v2243_v18 = vpop.f32.mrb[60].mxu1 }
 0x39a   : > { %v1434_v19 = vadd.f32 %v2243_v18, %v2705_v41  ;;  %v1425_v20 = vpop.f32.mrb[61].mxu1 }
 0x39b   : > { %v1426_v21 = vadd.f32 %v2705_v41, %v1425_v20  ;;  %v2244_v22 = vpop.f32.mrb[62].mxu1  ;;  %2285 = vmatprep.mubr.bf16.mxu0 %v1540_v17 }
 0x39c   : > { %v1437_v23 = vadd.f32 %v2244_v22, %v2705_v41  ;;  %v1428_v24 = vpop.f32.mrb[63].mxu1  ;;  %2286 = vmatmul.mubr.bf16.gmra.mrb[56].mxu0 %v1541_v16  ;;  %v1518_v26 = vmax.f32 %v1434_v19, 0.0 }
 0x39d   : > { %v1429_v25 = vadd.f32 %v2705_v41, %v1428_v24  ;;  %v1516_v28 = vmax.f32 %v1426_v21, 0.0 }
 0x39e   : > { %v1519_v27 = vmax.f32 %v1437_v23, 0.0 }
 0x39f   : > { %v1517_v29 = vmax.f32 %v1429_v25, 0.0  ;;  %v2742_v25 = vld [vmem:[%s2860_s10] ss:$0 sm:$0xff] }
 0x3a0   : > { %v1543_v30 = vpack.c.bf16 %v1519_v27, %v1518_v26 }
 0x3a1   : > { %v1542_v31 = vpack.c.bf16 %v1517_v29, %v1516_v28  ;;  %v2247_v32 = vpop.f32.mrb[64].mxu1 }
 0x3a2   : > { %v1450_v33 = vadd.f32 %v2247_v32, %v2705_v41  ;;  %v1441_v35 = vpop.f32.mrb[65].mxu1 }
 0x3a3   : > { %v1442_v36 = vadd.f32 %v2705_v41, %v1441_v35  ;;  %v2248_v38 = vpop.f32.mrb[66].mxu1  ;;  %2289 = vmatprep.mubr.bf16.mxu0 %v1542_v31 }
 0x3a4   : > { %v1453_v39 = vadd.f32 %v2248_v38, %v2705_v41  ;;  %v1444_v40 = vpop.f32.mrb[67].mxu1  ;;  %2290 = vmatmul.mubr.bf16.gmra.mrb[60].mxu0 %v1543_v30  ;;  %v1522_v42 = vmax.f32 %v1450_v33, 0.0 }
 0x3a5   : > { %v1445_v34 = vadd.f32 %v2705_v41, %v1444_v40  ;;  %v1520_v44 = vmax.f32 %v1442_v36, 0.0 }
 0x3a6   : > { %v1523_v43 = vmax.f32 %v1453_v39, 0.0 }
 0x3a7   : > { %v1521_v45 = vmax.f32 %v1445_v34, 0.0 }
 0x3a8   : > { %v1545_v46 = vpack.c.bf16 %v1523_v43, %v1522_v42 }
 0x3a9   : > { %v1544_v47 = vpack.c.bf16 %v1521_v45, %v1520_v44  ;;  %v2251_v57 = vpop.f32.mrb[68].mxu1 }
 0x3aa   : > { %v1466_v48 = vadd.f32 %v2251_v57, %v2705_v41  ;;  %v1457_v49 = vpop.f32.mrb[69].mxu1 }
 0x3ab   : > { %v1458_v50 = vadd.f32 %v2705_v41, %v1457_v49  ;;  %v2252_v63 = vpop.f32.mrb[70].mxu1  ;;  %2293 = vmatprep.mubr.bf16.mxu0 %v1544_v47 }
 0x3ac   : > { %v1469_v37 = vadd.f32 %v2252_v63, %v2705_v41  ;;  %v1460_v51 = vpop.f32.mrb[71].mxu1  ;;  %2294 = vmatmul.mubr.bf16.gmra.mrb[64].mxu0 %v1545_v46  ;;  %v1526_v53 = vmax.f32 %v1466_v48, 0.0 }
 0x3ad   : > { %v1461_v52 = vadd.f32 %v2705_v41, %v1460_v51  ;;  %v1524_v55 = vmax.f32 %v1458_v50, 0.0 }
 0x3ae   : > { %v1527_v54 = vmax.f32 %v1469_v37, 0.0 }
 0x3af   : > { %v1525_v56 = vmax.f32 %v1461_v52, 0.0 }
 0x3b0   : > { %v1547_v58 = vpack.c.bf16 %v1527_v54, %v1526_v53 }
 0x3b1   : > { %v1546_v59 = vpack.c.bf16 %v1525_v56, %v1524_v55  ;;  %v2255_v60 = vpop.f32.mrb[72].mxu1 }
 0x3b2   : > { %v1482_v61 = vadd.f32 %v2255_v60, %v2705_v41  ;;  %v1473_v62 = vpop.f32.mrb[73].mxu1 }
 0x3b3   : > { %v1474_v0 = vadd.f32 %v2705_v41, %v1473_v62  ;;  %v2256_v1 = vpop.f32.mrb[74].mxu1  ;;  %2297 = vmatprep.mubr.bf16.mxu0 %v1546_v59 }
 0x3b4   : > { %v1485_v2 = vadd.f32 %v2256_v1, %v2705_v41  ;;  %v1476_v3 = vpop.f32.mrb[75].mxu1  ;;  %2298 = vmatmul.mubr.bf16.gmra.mrb[68].mxu0 %v1547_v58  ;;  %v1530_v5 = vmax.f32 %v1482_v61, 0.0 }
 0x3b5   : > { %v1477_v4 = vadd.f32 %v2705_v41, %v1476_v3  ;;  %v1528_v7 = vmax.f32 %v1474_v0, 0.0 }
 0x3b6   : > { %v1531_v6 = vmax.f32 %v1485_v2, 0.0 }
 0x3b7   : > { %v1529_v8 = vmax.f32 %v1477_v4, 0.0 }
 0x3b8   : > { %v1549_v9 = vpack.c.bf16 %v1531_v6, %v1530_v5 }
 0x3b9   : > { %v1548_v10 = vpack.c.bf16 %v1529_v8, %v1528_v7  ;;  %v2259_v11 = vpop.f32.mrb[76].mxu1 }
 0x3ba   : > { %v1498_v12 = vadd.f32 %v2259_v11, %v2705_v41  ;;  %v1489_v13 = vpop.f32.mrb[77].mxu1 }
 0x3bb   : > { %v1490_v14 = vadd.f32 %v2705_v41, %v1489_v13  ;;  %v2260_v15 = vpop.f32.mrb[78].mxu1  ;;  %2301 = vmatprep.mubr.bf16.mxu0 %v1548_v10 }
 0x3bc   : > { %v1501_v16 = vadd.f32 %v2260_v15, %v2705_v41  ;;  %v1492_v17 = vpop.f32.mrb[79].mxu1  ;;  %2302 = vmatmul.mubr.bf16.gmra.mrb[72].mxu0 %v1549_v9  ;;  %v1534_v19 = vmax.f32 %v1498_v12, 0.0 }
 0x3bd   : > { %v1493_v18 = vadd.f32 %v2705_v41, %v1492_v17  ;;  %v1532_v21 = vmax.f32 %v1490_v14, 0.0 }
 0x3be   : > { %v1535_v20 = vmax.f32 %v1501_v16, 0.0 }
 0x3bf   : > { %v1533_v22 = vmax.f32 %v1493_v18, 0.0 }
 0x3c0   : > { %v1551_v23 = vpack.c.bf16 %v1535_v20, %v1534_v19 }
 0x3c1   : > { %v1550_v24 = vpack.c.bf16 %v1533_v22, %v1532_v21 }
 0x3c3   : > { %2305 = vmatprep.mubr.bf16.mxu0 %v1550_v24 }
 0x3c4   : > { %2306 = vmatmul.mubr.bf16.gmra.mrb[76].mxu0 %v1551_v23 }
 0x45f   : > { %v2279_v26 = vpop.f32.mrb[48].mxu0 }
 0x460   : > { %v1666_v27 = vadd.f32 %v2279_v26, %v2742_v25  ;;  %v1657_v28 = vpop.f32.mrb[49].mxu0 }
 0x461   : > { %v1658_v41 = vadd.f32 %v2742_v25, %v1657_v28  ;;  %v2280_v29 = vpop.f32.mrb[50].mxu0 }
 0x462   : > { %v1786_v30 = vmax.f32 %v1666_v27, 0.0  ;;  %v1669_v31 = vadd.f32 %v2280_v29, %v2742_v25  ;;  %v1660_v32 = vpop.f32.mrb[51].mxu0 }
 0x463   : > { %v1784_v33 = vmax.f32 %v1658_v41, 0.0  ;;  %v1661_v35 = vadd.f32 %v2742_v25, %v1660_v32 }
 0x464   : > { %1819 = vst.msk [vmem:[%s2750_s20 + $0x10] sm:$0xff] %vm1816_vm1, %v1786_v30  ;;  %v1787_v36 = vmax.f32 %v1669_v31, 0.0 }
 0x465   : > { %1817 = vst.msk [vmem:[%s2750_s20] sm:$0xff] %vm1816_vm1, %v1784_v33  ;;  %v1785_v38 = vmax.f32 %v1661_v35, 0.0 }
 0x466   : > { %1820 = vst.msk [vmem:[%s2750_s20 + $0x18] sm:$0xff] %vm1816_vm1, %v1787_v36 }
 0x467   : > { %1818 = vst.msk [vmem:[%s2750_s20 + $0x8] sm:$0xff] %vm1816_vm1, %v1785_v38  ;;  %v2283_v39 = vpop.f32.mrb[52].mxu0 }
 0x468   : > { %v1682_v40 = vadd.f32 %v2283_v39, %v2742_v25  ;;  %v1673_v34 = vpop.f32.mrb[53].mxu0 }
 0x469   : > { %v1674_v42 = vadd.f32 %v2742_v25, %v1673_v34  ;;  %v2284_v43 = vpop.f32.mrb[54].mxu0 }
 0x46a   : > { %v1790_v44 = vmax.f32 %v1682_v40, 0.0  ;;  %v1685_v45 = vadd.f32 %v2284_v43, %v2742_v25  ;;  %v1676_v46 = vpop.f32.mrb[55].mxu0 }
 0x46b   : > { %v1788_v47 = vmax.f32 %v1674_v42, 0.0  ;;  %v1677_v57 = vadd.f32 %v2742_v25, %v1676_v46 }
 0x46c   : > { %1823 = vst.msk [vmem:[%s2750_s20 + $0x30] sm:$0xff] %vm1816_vm1, %v1790_v44  ;;  %v1791_v48 = vmax.f32 %v1685_v45, 0.0 }
 0x46d   : > { %1821 = vst.msk [vmem:[%s2750_s20 + $0x20] sm:$0xff] %vm1816_vm1, %v1788_v47  ;;  %v1789_v49 = vmax.f32 %v1677_v57, 0.0 }
 0x46e   : > { %1824 = vst.msk [vmem:[%s2750_s20 + $0x38] sm:$0xff] %vm1816_vm1, %v1791_v48 }
 0x46f   : > { %1822 = vst.msk [vmem:[%s2750_s20 + $0x28] sm:$0xff] %vm1816_vm1, %v1789_v49  ;;  %v2287_v50 = vpop.f32.mrb[56].mxu0 }
 0x470   : > { %v1698_v63 = vadd.f32 %v2287_v50, %v2742_v25  ;;  %v1689_v37 = vpop.f32.mrb[57].mxu0 }
 0x471   : > { %v1690_v51 = vadd.f32 %v2742_v25, %v1689_v37  ;;  %v2288_v52 = vpop.f32.mrb[58].mxu0 }
 0x472   : > { %v1794_v53 = vmax.f32 %v1698_v63, 0.0  ;;  %v1701_v54 = vadd.f32 %v2288_v52, %v2742_v25  ;;  %v1692_v55 = vpop.f32.mrb[59].mxu0 }
 0x473   : > { %v1792_v56 = vmax.f32 %v1690_v51, 0.0  ;;  %v1693_v58 = vadd.f32 %v2742_v25, %v1692_v55 }
 0x474   : > { %1827 = vst.msk [vmem:[%s2750_s20 + $0x50] sm:$0xff] %vm1816_vm1, %v1794_v53  ;;  %v1795_v59 = vmax.f32 %v1701_v54, 0.0 }
 0x475   : > { %1825 = vst.msk [vmem:[%s2750_s20 + $0x40] sm:$0xff] %vm1816_vm1, %v1792_v56  ;;  %v1793_v60 = vmax.f32 %v1693_v58, 0.0 }
 0x476   : > { %1828 = vst.msk [vmem:[%s2750_s20 + $0x58] sm:$0xff] %vm1816_vm1, %v1795_v59 }
 0x477   : > { %1826 = vst.msk [vmem:[%s2750_s20 + $0x48] sm:$0xff] %vm1816_vm1, %v1793_v60  ;;  %v2291_v61 = vpop.f32.mrb[60].mxu0 }
 0x478   : > { %v1714_v62 = vadd.f32 %v2291_v61, %v2742_v25  ;;  %v1705_v0 = vpop.f32.mrb[61].mxu0 }
 0x479   : > { %v1706_v1 = vadd.f32 %v2742_v25, %v1705_v0  ;;  %v2292_v2 = vpop.f32.mrb[62].mxu0 }
 0x47a   : > { %v1798_v3 = vmax.f32 %v1714_v62, 0.0  ;;  %v1717_v4 = vadd.f32 %v2292_v2, %v2742_v25  ;;  %v1708_v5 = vpop.f32.mrb[63].mxu0 }
 0x47b   : > { %v1796_v6 = vmax.f32 %v1706_v1, 0.0  ;;  %v1709_v7 = vadd.f32 %v2742_v25, %v1708_v5 }
 0x47c   : > { %1831 = vst.msk [vmem:[%s2750_s20 + $0x70] sm:$0xff] %vm1816_vm1, %v1798_v3  ;;  %v1799_v8 = vmax.f32 %v1717_v4, 0.0 }
 0x47d   : > { %1829 = vst.msk [vmem:[%s2750_s20 + $0x60] sm:$0xff] %vm1816_vm1, %v1796_v6  ;;  %v1797_v9 = vmax.f32 %v1709_v7, 0.0 }
 0x47e   : > { %1832 = vst.msk [vmem:[%s2750_s20 + $0x78] sm:$0xff] %vm1816_vm1, %v1799_v8 }
 0x47f   : > { %1830 = vst.msk [vmem:[%s2750_s20 + $0x68] sm:$0xff] %vm1816_vm1, %v1797_v9  ;;  %v2295_v10 = vpop.f32.mrb[64].mxu0 }
 0x480   : > { %v1730_v11 = vadd.f32 %v2295_v10, %v2742_v25  ;;  %v1721_v12 = vpop.f32.mrb[65].mxu0 }
 0x481   : > { %v1722_v13 = vadd.f32 %v2742_v25, %v1721_v12  ;;  %v2296_v14 = vpop.f32.mrb[66].mxu0 }
 0x482   : > { %v1802_v15 = vmax.f32 %v1730_v11, 0.0  ;;  %v1733_v16 = vadd.f32 %v2296_v14, %v2742_v25  ;;  %v1724_v17 = vpop.f32.mrb[67].mxu0 }
 0x483   : > { %v1800_v18 = vmax.f32 %v1722_v13, 0.0  ;;  %v1725_v19 = vadd.f32 %v2742_v25, %v1724_v17 }
 0x484   : > { %1835 = vst.msk [vmem:[%s2750_s20 + $0x90] sm:$0xff] %vm1816_vm1, %v1802_v15  ;;  %v1803_v20 = vmax.f32 %v1733_v16, 0.0 }
 0x485   : > { %1833 = vst.msk [vmem:[%s2750_s20 + $0x80] sm:$0xff] %vm1816_vm1, %v1800_v18  ;;  %v1801_v21 = vmax.f32 %v1725_v19, 0.0 }
 0x486   : > { %1836 = vst.msk [vmem:[%s2750_s20 + $0x98] sm:$0xff] %vm1816_vm1, %v1803_v20 }
 0x487   : > { %1834 = vst.msk [vmem:[%s2750_s20 + $0x88] sm:$0xff] %vm1816_vm1, %v1801_v21  ;;  %v2299_v22 = vpop.f32.mrb[68].mxu0 }
 0x488   : > { %v1746_v23 = vadd.f32 %v2299_v22, %v2742_v25  ;;  %v1737_v24 = vpop.f32.mrb[69].mxu0 }
 0x489   : > { %v1738_v26 = vadd.f32 %v2742_v25, %v1737_v24  ;;  %v2300_v27 = vpop.f32.mrb[70].mxu0 }
 0x48a   : > { %v1806_v28 = vmax.f32 %v1746_v23, 0.0  ;;  %v1749_v41 = vadd.f32 %v2300_v27, %v2742_v25  ;;  %v1740_v29 = vpop.f32.mrb[71].mxu0 }
 0x48b   : > { %v1804_v30 = vmax.f32 %v1738_v26, 0.0  ;;  %v1741_v31 = vadd.f32 %v2742_v25, %v1740_v29 }
 0x48c   : > { %1839 = vst.msk [vmem:[%s2750_s20 + $0xb0] sm:$0xff] %vm1816_vm1, %v1806_v28  ;;  %v1807_v32 = vmax.f32 %v1749_v41, 0.0 }
 0x48d   : > { %1837 = vst.msk [vmem:[%s2750_s20 + $0xa0] sm:$0xff] %vm1816_vm1, %v1804_v30  ;;  %v1805_v33 = vmax.f32 %v1741_v31, 0.0 }
 0x48e   : > { %1840 = vst.msk [vmem:[%s2750_s20 + $0xb8] sm:$0xff] %vm1816_vm1, %v1807_v32 }
 0x48f   : > { %1838 = vst.msk [vmem:[%s2750_s20 + $0xa8] sm:$0xff] %vm1816_vm1, %v1805_v33  ;;  %v2303_v35 = vpop.f32.mrb[72].mxu0 }
 0x490   : > { %v1762_v36 = vadd.f32 %v2303_v35, %v2742_v25  ;;  %v1753_v38 = vpop.f32.mrb[73].mxu0 }
 0x491   : > { %v1754_v39 = vadd.f32 %v2742_v25, %v1753_v38  ;;  %v2304_v40 = vpop.f32.mrb[74].mxu0 }
 0x492   : > { %v1810_v34 = vmax.f32 %v1762_v36, 0.0  ;;  %v1765_v42 = vadd.f32 %v2304_v40, %v2742_v25  ;;  %v1756_v43 = vpop.f32.mrb[75].mxu0 }
 0x493   : > { %v1808_v44 = vmax.f32 %v1754_v39, 0.0  ;;  %v1757_v45 = vadd.f32 %v2742_v25, %v1756_v43 }
 0x494   : > { %1843 = vst.msk [vmem:[%s2750_s20 + $0xd0] sm:$0xff] %vm1816_vm1, %v1810_v34  ;;  %v1811_v46 = vmax.f32 %v1765_v42, 0.0 }
 0x495   : > { %1841 = vst.msk [vmem:[%s2750_s20 + $0xc0] sm:$0xff] %vm1816_vm1, %v1808_v44  ;;  %v1809_v47 = vmax.f32 %v1757_v45, 0.0 }
 0x496   : > { %1844 = vst.msk [vmem:[%s2750_s20 + $0xd8] sm:$0xff] %vm1816_vm1, %v1811_v46 }
 0x497   : > { %1842 = vst.msk [vmem:[%s2750_s20 + $0xc8] sm:$0xff] %vm1816_vm1, %v1809_v47  ;;  %v2307_v57 = vpop.f32.mrb[76].mxu0 }
 0x498   : > { %v1778_v48 = vadd.f32 %v2307_v57, %v2742_v25  ;;  %v1769_v49 = vpop.f32.mrb[77].mxu0 }
 0x499   : > { %v1770_v50 = vadd.f32 %v2742_v25, %v1769_v49  ;;  %v2308_v63 = vpop.f32.mrb[78].mxu0 }
 0x49a   : > { %v1814_v37 = vmax.f32 %v1778_v48, 0.0  ;;  %v1781_v51 = vadd.f32 %v2308_v63, %v2742_v25  ;;  %v1772_v52 = vpop.f32.mrb[79].mxu0 }
 0x49b   : > { %v1812_v53 = vmax.f32 %v1770_v50, 0.0  ;;  %v1773_v54 = vadd.f32 %v2742_v25, %v1772_v52 }
 0x49c   : > { %1847 = vst.msk [vmem:[%s2750_s20 + $0xf0] sm:$0xff] %vm1816_vm1, %v1814_v37  ;;  %v1815_v55 = vmax.f32 %v1781_v51, 0.0 }
 0x49d   : > { %1845 = vst.msk [vmem:[%s2750_s20 + $0xe0] sm:$0xff] %vm1816_vm1, %v1812_v53  ;;  %v1813_v56 = vmax.f32 %v1773_v54, 0.0 }
 0x49e   : > { %1848 = vst.msk [vmem:[%s2750_s20 + $0xf8] sm:$0xff] %vm1816_vm1, %v1815_v55 }
 0x49f   : > { %1846 = vst.msk [vmem:[%s2750_s20 + $0xe8] sm:$0xff] %vm1816_vm1, %v1813_v56 }
 0x4a0 PF: > { %s21_s17 = sadd.s32 1, %s2358_s17  }
 0x4a1   : > { %p18_p4 = scmp.ge.s32.totalorder %s21_s17, 4  }
 0x4a3   :  { %20 = sbr.rel (!%p18_p4) target bundleno = 1 (0x1), region = 94 }

</bundles_post_ra>
